<compile_context>
chip_gen: v6e
topology: v6e:2x2x1
jax: 0.10.0
libtpu: 0.0.40
codegen_flags: <defaults>
</compile_context>

<pallas_src>
import functools
import math

import jax
import jax.numpy as jnp
from jax.experimental import pallas as pl
from jax.experimental.pallas import tpu as pltpu

EPS = 1e-5  # PyTorch LayerNorm default


# ----------------------------- tiling helpers -------------------------------

def _pick_tile(dim, cap, align):
    """Largest divisor of `dim` <= cap, preferring multiples of `align`."""
    if dim <= cap:
        return dim
    best = None
    for t in range(cap, 0, -1):
        if dim % t == 0:
            if t % align == 0:
                return t
            if best is None:
                best = t
    return best if best is not None else dim


# ------------------------------ linear kernel -------------------------------

def _linear_kernel(x_ref, w_ref, b_ref, o_ref, acc_ref, *, activation):
    k = pl.program_id(2)

    @pl.when(k == 0)
    def _init():
        acc_ref[...] = jnp.zeros_like(acc_ref)

    acc_ref[...] += jnp.dot(x_ref[...], w_ref[...],
                            preferred_element_type=jnp.float32)

    @pl.when(k == pl.num_programs(2) - 1)
    def _finalize():
        y = acc_ref[...] + b_ref[...].astype(jnp.float32)
        if activation == "relu":
            y = jnp.maximum(y, 0.0)
        o_ref[...] = y.astype(o_ref.dtype)


def pallas_linear(x, w, b, activation=None, tm_cap=256, tn_cap=256, tk_cap=512):
    """y = act(x @ w + b).  x:(M,K), w:(K,N) pre-transposed, b:(N,)."""
    M, K = x.shape
    K2, N = w.shape
    assert K == K2
    tm = _pick_tile(M, tm_cap, 8)
    tn = _pick_tile(N, tn_cap, 128)
    tk = _pick_tile(K, tk_cap, 128)
    grid = (M // tm, N // tn, K // tk)
    cost = pl.CostEstimate(
        flops=2 * M * N * K,
        transcendentals=0,
        bytes_accessed=4 * (M * K + K * N + M * N + N))
    return pl.pallas_call(
        functools.partial(_linear_kernel, activation=activation),
        out_shape=jax.ShapeDtypeStruct((M, N), x.dtype),
        grid_spec=pltpu.PrefetchScalarGridSpec(
            num_scalar_prefetch=0,
            grid=grid,
            in_specs=[
                pl.BlockSpec((tm, tk), lambda i, j, k: (i, k)),
                pl.BlockSpec((tk, tn), lambda i, j, k: (k, j)),
                pl.BlockSpec((1, tn), lambda i, j, k: (0, j)),
            ],
            out_specs=pl.BlockSpec((tm, tn), lambda i, j, k: (i, j)),
            scratch_shapes=[pltpu.VMEM((tm, tn), jnp.float32)],
        ),
        compiler_params=pltpu.CompilerParams(
            dimension_semantics=("parallel", "parallel", "arbitrary")),
        cost_estimate=cost,
    )(x, w, b.reshape(1, N))


# ------------------- linear + residual + LayerNorm (fused) ------------------

def _linear_res_ln_kernel(x_ref, w_ref, b_ref, res_ref, g_ref, beta_ref,
                          o_ref, acc_ref):
    k = pl.program_id(1)

    @pl.when(k == 0)
    def _init():
        acc_ref[...] = jnp.zeros_like(acc_ref)

    acc_ref[...] += jnp.dot(x_ref[...], w_ref[...],
                            preferred_element_type=jnp.float32)

    @pl.when(k == pl.num_programs(1) - 1)
    def _finalize():
        z = (acc_ref[...] + b_ref[...].astype(jnp.float32)
             + res_ref[...].astype(jnp.float32))
        mean = jnp.mean(z, axis=-1, keepdims=True)
        var = jnp.mean(jnp.square(z - mean), axis=-1, keepdims=True)
        zn = (z - mean) * jax.lax.rsqrt(var + EPS)
        o_ref[...] = (zn * g_ref[...] + beta_ref[...]).astype(o_ref.dtype)


def pallas_linear_residual_ln(x, w, b, res, gamma, beta,
                              tm_cap=256, tk_cap=512):
    """out = LayerNorm(res + x @ w + b).  Normalizes over the full N dim, so the
    output tile carries the whole feature axis (tn == N)."""
    M, K = x.shape
    _, N = w.shape
    tm = _pick_tile(M, tm_cap, 8)
    tk = _pick_tile(K, tk_cap, 128)
    grid = (M // tm, K // tk)
    cost = pl.CostEstimate(
        flops=2 * M * N * K + 10 * M * N,
        transcendentals=M,
        bytes_accessed=4 * (M * K + K * N + 2 * M * N + 3 * N))
    return pl.pallas_call(
        _linear_res_ln_kernel,
        out_shape=jax.ShapeDtypeStruct((M, N), x.dtype),
        grid_spec=pltpu.PrefetchScalarGridSpec(
            num_scalar_prefetch=0,
            grid=grid,
            in_specs=[
                pl.BlockSpec((tm, tk), lambda i, k: (i, k)),
                pl.BlockSpec((tk, N), lambda i, k: (k, 0)),
                pl.BlockSpec((1, N), lambda i, k: (0, 0)),
                pl.BlockSpec((tm, N), lambda i, k: (i, 0)),
                pl.BlockSpec((1, N), lambda i, k: (0, 0)),
                pl.BlockSpec((1, N), lambda i, k: (0, 0)),
            ],
            out_specs=pl.BlockSpec((tm, N), lambda i, k: (i, 0)),
            scratch_shapes=[pltpu.VMEM((tm, N), jnp.float32)],
        ),
        compiler_params=pltpu.CompilerParams(
            dimension_semantics=("parallel", "arbitrary")),
        cost_estimate=cost,
    )(x, w, b.reshape(1, N), res, gamma.reshape(1, N), beta.reshape(1, N))


# ---------------------- flash-style multi-head attention --------------------

def _flash_attn_kernel(q_ref, k_ref, v_ref, o_ref, m_sc, l_sc, acc_sc,
                       *, nhead, scale):
    # q_ref: (tq, E), k_ref/v_ref: (tkv, E), heads = contiguous dh column groups.
    ki = pl.program_id(2)

    @pl.when(ki == 0)
    def _init():
        m_sc[...] = jnp.full_like(m_sc, -jnp.inf)
        l_sc[...] = jnp.zeros_like(l_sc)
        acc_sc[...] = jnp.zeros_like(acc_sc)

    E = q_ref.shape[-1]
    dh = E // nhead

    for h in range(nhead):                       # static unroll over heads
        lo, hi = h * dh, (h + 1) * dh
        q = q_ref[:, lo:hi].astype(jnp.float32)      # (tq, dh)
        kk = k_ref[:, lo:hi].astype(jnp.float32)     # (tkv, dh)
        v = v_ref[:, lo:hi].astype(jnp.float32)      # (tkv, dh)

        s = jnp.dot(q, kk.T, preferred_element_type=jnp.float32) * scale
        m_prev = m_sc[h]                             # (tq, 1)
        l_prev = l_sc[h]
        acc_prev = acc_sc[h]                         # (tq, dh)

        m_new = jnp.maximum(m_prev, jnp.max(s, axis=-1, keepdims=True))
        alpha = jnp.exp(m_prev - m_new)
        p = jnp.exp(s - m_new)
        l_new = alpha * l_prev + jnp.sum(p, axis=-1, keepdims=True)
        acc_new = alpha * acc_prev + jnp.dot(p, v,
                                             preferred_element_type=jnp.float32)
        m_sc[h] = m_new
        l_sc[h] = l_new
        acc_sc[h] = acc_new

    @pl.when(ki == pl.num_programs(2) - 1)
    def _finalize():
        for h in range(nhead):
            inv = pl.reciprocal(l_sc[h], approx=True)
            o_ref[:, h * dh:(h + 1) * dh] = (acc_sc[h] * inv).astype(o_ref.dtype)


def pallas_attention(q, k, v, nhead, tq_cap=128, tkv_cap=256):
    """Multi-head SDPA on (B, S, E) tensors (no mask, no dropout)."""
    B, S, E = q.shape
    dh = E // nhead
    tq = _pick_tile(S, tq_cap, 8)
    tkv = _pick_tile(S, tkv_cap, 8)
    grid = (B, S // tq, S // tkv)
    scale = 1.0 / math.sqrt(dh)
    cost = pl.CostEstimate(
        flops=4 * B * nhead * S * S * dh,
        transcendentals=B * nhead * S * S,
        bytes_accessed=4 * 4 * B * S * E)
    kern = functools.partial(_flash_attn_kernel, nhead=nhead, scale=scale)
    return pl.pallas_call(
        kern,
        out_shape=jax.ShapeDtypeStruct((B, S, E), q.dtype),
        grid_spec=pltpu.PrefetchScalarGridSpec(
            num_scalar_prefetch=0,
            grid=grid,
            in_specs=[
                pl.BlockSpec((None, tq, E), lambda b, qi, ki: (b, qi, 0)),
                pl.BlockSpec((None, tkv, E), lambda b, qi, ki: (b, ki, 0)),
                pl.BlockSpec((None, tkv, E), lambda b, qi, ki: (b, ki, 0)),
            ],
            out_specs=pl.BlockSpec((None, tq, E), lambda b, qi, ki: (b, qi, 0)),
            scratch_shapes=[
                pltpu.VMEM((nhead, tq, 1), jnp.float32),    # m
                pltpu.VMEM((nhead, tq, 1), jnp.float32),    # l
                pltpu.VMEM((nhead, tq, dh), jnp.float32),   # acc
            ],
        ),
        compiler_params=pltpu.CompilerParams(
            dimension_semantics=("parallel", "parallel", "arbitrary")),
        cost_estimate=cost,
    )(q, k, v)


# --------------------------- Transformer forward ----------------------------

def encoder_layer_forward(x, p, nhead):
    # x: (B, S, E); post-norm TransformerEncoderLayer (PyTorch defaults).
    # TODO(synk): no attention mask / key-padding mask support; dropout = identity.
    B, S, E = x.shape
    x2 = x.reshape(B * S, E)

    # self-attention: fused QKV projection, flash attention, fused out_proj+LN1
    qkv = pallas_linear(x2, p["in_proj_w"], p["in_proj_b"])          # (B*S, 3E)
    q, k, v = jnp.split(qkv, 3, axis=-1)
    attn = pallas_attention(q.reshape(B, S, E), k.reshape(B, S, E),
                            v.reshape(B, S, E), nhead)               # (B, S, E)
    x_res = pallas_linear_residual_ln(attn.reshape(B * S, E),
                                      p["out_proj_w"], p["out_proj_b"],
                                      x2, p["ln1_g"], p["ln1_b"])    # (B*S, E)

    # feed-forward: linear1+ReLU, then fused linear2+residual+LN2
    h = pallas_linear(x_res, p["lin1_w"], p["lin1_b"], activation="relu")
    out = pallas_linear_residual_ln(h, p["lin2_w"], p["lin2_b"],
                                    x_res, p["ln2_g"], p["ln2_b"])
    return out.reshape(B, S, E)


def transformer_net_forward(x, params, nhead):
    B, S, Din = x.shape
    h = pallas_linear(x.reshape(B * S, Din), params["fc_w"], params["fc_b"])
    E = params["fc_w"].shape[1]
    h = h.reshape(B, S, E)
    for lp in params["layers"]:
        h = encoder_layer_forward(h, lp, nhead)
    return h


# ------------------------------- param init ---------------------------------

def init_params(key, d_model, nhead, dim_feedforward, num_layers):
    E = dim_feedforward
    scale = 0.02

    def nrm(k, shape):
        return scale * jax.random.normal(k, shape, dtype=jnp.float32)

    keys = jax.random.split(key, 2 + num_layers)
    # all weights pre-laid-out as (K, N) so no transposes appear in the forward
    params = {
        "fc_w": nrm(keys[0], (d_model, E)),
        "fc_b": nrm(keys[1], (E,)),
        "layers": [],
    }
    for li in range(num_layers):
        ks = jax.random.split(keys[2 + li], 8)
        params["layers"].append({
            "in_proj_w": nrm(ks[0], (E, 3 * E)),
            "in_proj_b": nrm(ks[1], (3 * E,)),
            "out_proj_w": nrm(ks[2], (E, E)),
            "out_proj_b": nrm(ks[3], (E,)),
            "lin1_w": nrm(ks[4], (E, E)),     # dim_feedforward == E in this net
            "lin1_b": nrm(ks[5], (E,)),
            "lin2_w": nrm(ks[6], (E, E)),
            "lin2_b": nrm(ks[7], (E,)),
            "ln1_g": jnp.ones((E,), jnp.float32),
            "ln1_b": jnp.zeros((E,), jnp.float32),
            "ln2_g": jnp.ones((E,), jnp.float32),
            "ln2_b": jnp.zeros((E,), jnp.float32),
        })
    return params


# ----------------------------------- main ------------------------------------

if __name__ == "__main__":
    d_model, nhead, dim_feedforward, num_layers = 16, 4, 32, 2
    B, S = 2, 8

    key = jax.random.PRNGKey(0)
    kx, kp = jax.random.split(key)
    x = jax.random.normal(kx, (B, S, d_model), dtype=jnp.float32)
    params = init_params(kp, d_model, nhead, dim_feedforward, num_layers)

    fwd = jax.jit(functools.partial(transformer_net_forward, nhead=nhead))
    out = jax.block_until_ready(fwd(x, params))

    assert out.shape == (B, S, dim_feedforward), out.shape
    assert bool(jnp.all(jnp.isfinite(out)))
    print("KERNEL_OK")
</pallas_src>

<mosaic_0001>
module attributes {stable_mosaic.version = 11 : i64} {
  func.func @_linear_kernel(%arg0: i32, %arg1: i32, %arg2: i32, %arg3: memref<16x16xf32, #tpu.memory_space<vmem>>, %arg4: memref<16x32xf32, #tpu.memory_space<vmem>>, %arg5: memref<1x32xf32, #tpu.memory_space<vmem>>, %arg6: memref<16x32xf32, #tpu.memory_space<vmem>>, %arg7: memref<16x32xf32, #tpu.memory_space<vmem>>) attributes {dimension_semantics = [#tpu.dimension_semantics<parallel>, #tpu.dimension_semantics<parallel>, #tpu.dimension_semantics<arbitrary>], iteration_bounds = array<i64: 1, 1, 1>, scalar_prefetch = 0 : i64, scratch_operands = 1 : i64, tpu.core_type = #tpu.core_type<tc>, window_params = [{transform_indices = @transform_0, window_bounds = array<i64: 16, 16>}, {transform_indices = @transform_1, window_bounds = array<i64: 16, 32>}, {transform_indices = @transform_2, window_bounds = array<i64: 1, 32>}, {transform_indices = @transform_3, window_bounds = array<i64: 16, 32>}]} {
    %c0_i32 = arith.constant 0 : i32
    %0 = arith.cmpi eq, %arg2, %c0_i32 : i32
    %1 = arith.extui %0 : i1 to i32
    %c0_i32_0 = arith.constant 0 : i32
    %2 = arith.cmpi ne, %1, %c0_i32_0 : i32
    scf.if %2 {
      %cst_10 = arith.constant 0.000000e+00 : f32
      %12 = vector.broadcast %cst_10 : f32 to vector<16x32xf32>
      %c0_11 = arith.constant 0 : index
      %c0_12 = arith.constant 0 : index
      %13 = vector.load %arg7[%c0_11, %c0_12] : memref<16x32xf32, #tpu.memory_space<vmem>>, vector<16x32xf32>
      tpu.vector_store %arg7[%c0_11, %c0_12], %12 {strides = array<i32>} : memref<16x32xf32, #tpu.memory_space<vmem>>, vector<16x32xf32>,
    } else {
    }
    %c0 = arith.constant 0 : index
    %c0_1 = arith.constant 0 : index
    %3 = vector.load %arg7[%c0, %c0_1] : memref<16x32xf32, #tpu.memory_space<vmem>>, vector<16x32xf32>
    %c0_2 = arith.constant 0 : index
    %c0_3 = arith.constant 0 : index
    %4 = vector.load %arg3[%c0_2, %c0_3] : memref<16x16xf32, #tpu.memory_space<vmem>>, vector<16x16xf32>
    %c0_4 = arith.constant 0 : index
    %c0_5 = arith.constant 0 : index
    %5 = vector.load %arg4[%c0_4, %c0_5] : memref<16x32xf32, #tpu.memory_space<vmem>>, vector<16x32xf32>
    %cst = arith.constant dense<0.000000e+00> : vector<16x32xf32>
    %6 = tpu.matmul %4, %5, %cst {dimension_numbers = #tpu.dot_dimension_numbers<[1], [0], [0], [1], [0, 0, 1, 1], [], []>} : vector<16x16xf32>, vector<16x32xf32>, vector<16x32xf32> -> vector<16x32xf32>
    %7 = arith.addf %3, %6 : vector<16x32xf32>
    %c0_6 = arith.constant 0 : index
    %c0_7 = arith.constant 0 : index
    %8 = vector.load %arg7[%c0_6, %c0_7] : memref<16x32xf32, #tpu.memory_space<vmem>>, vector<16x32xf32>
    tpu.vector_store %arg7[%c0_6, %c0_7], %7 {strides = array<i32>} : memref<16x32xf32, #tpu.memory_space<vmem>>, vector<16x32xf32>,
    %c0_i32_8 = arith.constant 0 : i32
    %9 = arith.cmpi eq, %arg2, %c0_i32_8 : i32
    %10 = arith.extui %9 : i1 to i32
    %c0_i32_9 = arith.constant 0 : i32
    %11 = arith.cmpi ne, %10, %c0_i32_9 : i32
    scf.if %11 {
      %c0_10 = arith.constant 0 : index
      %c0_11 = arith.constant 0 : index
      %12 = vector.load %arg7[%c0_10, %c0_11] : memref<16x32xf32, #tpu.memory_space<vmem>>, vector<16x32xf32>
      %c0_12 = arith.constant 0 : index
      %c0_13 = arith.constant 0 : index
      %13 = vector.load %arg5[%c0_12, %c0_13] : memref<1x32xf32, #tpu.memory_space<vmem>>, vector<1x32xf32>
      %14 = vector.broadcast %13 : vector<1x32xf32> to vector<16x32xf32>
      %15 = arith.addf %12, %14 : vector<16x32xf32>
      %c0_14 = arith.constant 0 : index
      %c0_15 = arith.constant 0 : index
      %16 = vector.load %arg6[%c0_14, %c0_15] : memref<16x32xf32, #tpu.memory_space<vmem>>, vector<16x32xf32>
      tpu.vector_store %arg6[%c0_14, %c0_15], %15 {strides = array<i32>} : memref<16x32xf32, #tpu.memory_space<vmem>>, vector<16x32xf32>,
    } else {
    }
    return
  }
  func.func @transform_0(%arg0: i32, %arg1: i32, %arg2: i32) -> (i32, i32) {
    %c0_i32 = arith.constant 0 : i32
    return %arg0, %arg2 : i32, i32
  }
  func.func @transform_1(%arg0: i32, %arg1: i32, %arg2: i32) -> (i32, i32) {
    %c0_i32 = arith.constant 0 : i32
    return %arg2, %arg1 : i32, i32
  }
  func.func @transform_2(%arg0: i32, %arg1: i32, %arg2: i32) -> (i32, i32) {
    %c0_i32 = arith.constant 0 : i32
    %c0_i32_0 = arith.constant 0 : i32
    return %c0_i32, %arg1 : i32, i32
  }
  func.func @transform_3(%arg0: i32, %arg1: i32, %arg2: i32) -> (i32, i32) {
    %c0_i32 = arith.constant 0 : i32
    return %arg0, %arg1 : i32, i32
  }
}

module attributes {stable_mosaic.version = 11 : i64} {
  func.func @_linear_kernel(%arg0: i32, %arg1: i32, %arg2: i32, %arg3: memref<16x32xf32, #tpu.memory_space<vmem>>, %arg4: memref<32x96xf32, #tpu.memory_space<vmem>>, %arg5: memref<1x96xf32, #tpu.memory_space<vmem>>, %arg6: memref<16x96xf32, #tpu.memory_space<vmem>>, %arg7: memref<16x96xf32, #tpu.memory_space<vmem>>) attributes {dimension_semantics = [#tpu.dimension_semantics<parallel>, #tpu.dimension_semantics<parallel>, #tpu.dimension_semantics<arbitrary>], iteration_bounds = array<i64: 1, 1, 1>, scalar_prefetch = 0 : i64, scratch_operands = 1 : i64, tpu.core_type = #tpu.core_type<tc>, window_params = [{transform_indices = @transform_0, window_bounds = array<i64: 16, 32>}, {transform_indices = @transform_1, window_bounds = array<i64: 32, 96>}, {transform_indices = @transform_2, window_bounds = array<i64: 1, 96>}, {transform_indices = @transform_3, window_bounds = array<i64: 16, 96>}]} {
    %c0_i32 = arith.constant 0 : i32
    %0 = arith.cmpi eq, %arg2, %c0_i32 : i32
    %1 = arith.extui %0 : i1 to i32
    %c0_i32_0 = arith.constant 0 : i32
    %2 = arith.cmpi ne, %1, %c0_i32_0 : i32
    scf.if %2 {
      %cst_10 = arith.constant 0.000000e+00 : f32
      %12 = vector.broadcast %cst_10 : f32 to vector<16x96xf32>
      %c0_11 = arith.constant 0 : index
      %c0_12 = arith.constant 0 : index
      %13 = vector.load %arg7[%c0_11, %c0_12] : memref<16x96xf32, #tpu.memory_space<vmem>>, vector<16x96xf32>
      tpu.vector_store %arg7[%c0_11, %c0_12], %12 {strides = array<i32>} : memref<16x96xf32, #tpu.memory_space<vmem>>, vector<16x96xf32>,
    } else {
    }
    %c0 = arith.constant 0 : index
    %c0_1 = arith.constant 0 : index
    %3 = vector.load %arg7[%c0, %c0_1] : memref<16x96xf32, #tpu.memory_space<vmem>>, vector<16x96xf32>
    %c0_2 = arith.constant 0 : index
    %c0_3 = arith.constant 0 : index
    %4 = vector.load %arg3[%c0_2, %c0_3] : memref<16x32xf32, #tpu.memory_space<vmem>>, vector<16x32xf32>
    %c0_4 = arith.constant 0 : index
    %c0_5 = arith.constant 0 : index
    %5 = vector.load %arg4[%c0_4, %c0_5] : memref<32x96xf32, #tpu.memory_space<vmem>>, vector<32x96xf32>
    %cst = arith.constant dense<0.000000e+00> : vector<16x96xf32>
    %6 = tpu.matmul %4, %5, %cst {dimension_numbers = #tpu.dot_dimension_numbers<[1], [0], [0], [1], [0, 0, 1, 1], [], []>} : vector<16x32xf32>, vector<32x96xf32>, vector<16x96xf32> -> vector<16x96xf32>
    %7 = arith.addf %3, %6 : vector<16x96xf32>
    %c0_6 = arith.constant 0 : index
    %c0_7 = arith.constant 0 : index
    %8 = vector.load %arg7[%c0_6, %c0_7] : memref<16x96xf32, #tpu.memory_space<vmem>>, vector<16x96xf32>
    tpu.vector_store %arg7[%c0_6, %c0_7], %7 {strides = array<i32>} : memref<16x96xf32, #tpu.memory_space<vmem>>, vector<16x96xf32>,
    %c0_i32_8 = arith.constant 0 : i32
    %9 = arith.cmpi eq, %arg2, %c0_i32_8 : i32
    %10 = arith.extui %9 : i1 to i32
    %c0_i32_9 = arith.constant 0 : i32
    %11 = arith.cmpi ne, %10, %c0_i32_9 : i32
    scf.if %11 {
      %c0_10 = arith.constant 0 : index
      %c0_11 = arith.constant 0 : index
      %12 = vector.load %arg7[%c0_10, %c0_11] : memref<16x96xf32, #tpu.memory_space<vmem>>, vector<16x96xf32>
      %c0_12 = arith.constant 0 : index
      %c0_13 = arith.constant 0 : index
      %13 = vector.load %arg5[%c0_12, %c0_13] : memref<1x96xf32, #tpu.memory_space<vmem>>, vector<1x96xf32>
      %14 = vector.broadcast %13 : vector<1x96xf32> to vector<16x96xf32>
      %15 = arith.addf %12, %14 : vector<16x96xf32>
      %c0_14 = arith.constant 0 : index
      %c0_15 = arith.constant 0 : index
      %16 = vector.load %arg6[%c0_14, %c0_15] : memref<16x96xf32, #tpu.memory_space<vmem>>, vector<16x96xf32>
      tpu.vector_store %arg6[%c0_14, %c0_15], %15 {strides = array<i32>} : memref<16x96xf32, #tpu.memory_space<vmem>>, vector<16x96xf32>,
    } else {
    }
    return
  }
  func.func @transform_0(%arg0: i32, %arg1: i32, %arg2: i32) -> (i32, i32) {
    %c0_i32 = arith.constant 0 : i32
    return %arg0, %arg2 : i32, i32
  }
  func.func @transform_1(%arg0: i32, %arg1: i32, %arg2: i32) -> (i32, i32) {
    %c0_i32 = arith.constant 0 : i32
    return %arg2, %arg1 : i32, i32
  }
  func.func @transform_2(%arg0: i32, %arg1: i32, %arg2: i32) -> (i32, i32) {
    %c0_i32 = arith.constant 0 : i32
    %c0_i32_0 = arith.constant 0 : i32
    return %c0_i32, %arg1 : i32, i32
  }
  func.func @transform_3(%arg0: i32, %arg1: i32, %arg2: i32) -> (i32, i32) {
    %c0_i32 = arith.constant 0 : i32
    return %arg0, %arg1 : i32, i32
  }
}

module attributes {stable_mosaic.version = 11 : i64} {
  func.func @_linear_res_ln_kernel(%arg0: i32, %arg1: i32, %arg2: memref<16x32xf32, #tpu.memory_space<vmem>>, %arg3: memref<32x32xf32, #tpu.memory_space<vmem>>, %arg4: memref<1x32xf32, #tpu.memory_space<vmem>>, %arg5: memref<16x32xf32, #tpu.memory_space<vmem>>, %arg6: memref<1x32xf32, #tpu.memory_space<vmem>>, %arg7: memref<1x32xf32, #tpu.memory_space<vmem>>, %arg8: memref<16x32xf32, #tpu.memory_space<vmem>>, %arg9: memref<16x32xf32, #tpu.memory_space<vmem>>) attributes {dimension_semantics = [#tpu.dimension_semantics<parallel>, #tpu.dimension_semantics<arbitrary>], iteration_bounds = array<i64: 1, 1>, scalar_prefetch = 0 : i64, scratch_operands = 1 : i64, tpu.core_type = #tpu.core_type<tc>, window_params = [{transform_indices = @transform_0, window_bounds = array<i64: 16, 32>}, {transform_indices = @transform_1, window_bounds = array<i64: 32, 32>}, {pipeline_mode = #tpu.pipeline_mode<synchronous>, transform_indices = @transform_2, window_bounds = array<i64: 1, 32>}, {transform_indices = @transform_3, window_bounds = array<i64: 16, 32>}, {pipeline_mode = #tpu.pipeline_mode<synchronous>, transform_indices = @transform_4, window_bounds = array<i64: 1, 32>}, {pipeline_mode = #tpu.pipeline_mode<synchronous>, transform_indices = @transform_5, window_bounds = array<i64: 1, 32>}, {transform_indices = @transform_6, window_bounds = array<i64: 16, 32>}]} {
    %c0_i32 = arith.constant 0 : i32
    %0 = arith.cmpi eq, %arg1, %c0_i32 : i32
    %1 = arith.extui %0 : i1 to i32
    %c0_i32_0 = arith.constant 0 : i32
    %2 = arith.cmpi ne, %1, %c0_i32_0 : i32
    scf.if %2 {
      %cst_10 = arith.constant 0.000000e+00 : f32
      %12 = vector.broadcast %cst_10 : f32 to vector<16x32xf32>
      %c0_11 = arith.constant 0 : index
      %c0_12 = arith.constant 0 : index
      %13 = vector.load %arg9[%c0_11, %c0_12] : memref<16x32xf32, #tpu.memory_space<vmem>>, vector<16x32xf32>
      tpu.vector_store %arg9[%c0_11, %c0_12], %12 {strides = array<i32>} : memref<16x32xf32, #tpu.memory_space<vmem>>, vector<16x32xf32>,
    } else {
    }
    %c0 = arith.constant 0 : index
    %c0_1 = arith.constant 0 : index
    %3 = vector.load %arg9[%c0, %c0_1] : memref<16x32xf32, #tpu.memory_space<vmem>>, vector<16x32xf32>
    %c0_2 = arith.constant 0 : index
    %c0_3 = arith.constant 0 : index
    %4 = vector.load %arg2[%c0_2, %c0_3] : memref<16x32xf32, #tpu.memory_space<vmem>>, vector<16x32xf32>
    %c0_4 = arith.constant 0 : index
    %c0_5 = arith.constant 0 : index
    %5 = vector.load %arg3[%c0_4, %c0_5] : memref<32x32xf32, #tpu.memory_space<vmem>>, vector<32x32xf32>
    %cst = arith.constant dense<0.000000e+00> : vector<16x32xf32>
    %6 = tpu.matmul %4, %5, %cst {dimension_numbers = #tpu.dot_dimension_numbers<[1], [0], [0], [1], [0, 0, 1, 1], [], []>} : vector<16x32xf32>, vector<32x32xf32>, vector<16x32xf32> -> vector<16x32xf32>
    %7 = arith.addf %3, %6 : vector<16x32xf32>
    %c0_6 = arith.constant 0 : index
    %c0_7 = arith.constant 0 : index
    %8 = vector.load %arg9[%c0_6, %c0_7] : memref<16x32xf32, #tpu.memory_space<vmem>>, vector<16x32xf32>
    tpu.vector_store %arg9[%c0_6, %c0_7], %7 {strides = array<i32>} : memref<16x32xf32, #tpu.memory_space<vmem>>, vector<16x32xf32>,
    %c0_i32_8 = arith.constant 0 : i32
    %9 = arith.cmpi eq, %arg1, %c0_i32_8 : i32
    %10 = arith.extui %9 : i1 to i32
    %c0_i32_9 = arith.constant 0 : i32
    %11 = arith.cmpi ne, %10, %c0_i32_9 : i32
    scf.if %11 {
      %c0_10 = arith.constant 0 : index
      %c0_11 = arith.constant 0 : index
      %12 = vector.load %arg9[%c0_10, %c0_11] : memref<16x32xf32, #tpu.memory_space<vmem>>, vector<16x32xf32>
      %c0_12 = arith.constant 0 : index
      %c0_13 = arith.constant 0 : index
      %13 = vector.load %arg4[%c0_12, %c0_13] : memref<1x32xf32, #tpu.memory_space<vmem>>, vector<1x32xf32>
      %14 = vector.broadcast %13 : vector<1x32xf32> to vector<16x32xf32>
      %15 = arith.addf %12, %14 : vector<16x32xf32>
      %c0_14 = arith.constant 0 : index
      %c0_15 = arith.constant 0 : index
      %16 = vector.load %arg5[%c0_14, %c0_15] : memref<16x32xf32, #tpu.memory_space<vmem>>, vector<16x32xf32>
      %17 = arith.addf %15, %16 : vector<16x32xf32>
      %cst_16 = arith.constant dense<0.000000e+00> : vector<16xf32>
      %18 = vector.multi_reduction <add>, %17, %cst_16 [1] : vector<16x32xf32> to vector<16xf32>
      %19 = vector.shape_cast %18 : vector<16xf32> to vector<16x1xf32>
      %cst_17 = arith.constant 3.200000e+01 : f32
      %20 = vector.broadcast %cst_17 : f32 to vector<16x1xf32>
      %21 = arith.divf %19, %20 : vector<16x1xf32>
      %22 = vector.broadcast %21 : vector<16x1xf32> to vector<16x32xf32>
      %23 = arith.subf %17, %22 : vector<16x32xf32>
      %24 = arith.mulf %23, %23 : vector<16x32xf32>
      %cst_18 = arith.constant dense<0.000000e+00> : vector<16xf32>
      %25 = vector.multi_reduction <add>, %24, %cst_18 [1] : vector<16x32xf32> to vector<16xf32>
      %26 = vector.shape_cast %25 : vector<16xf32> to vector<16x1xf32>
      %cst_19 = arith.constant 3.200000e+01 : f32
      %27 = vector.broadcast %cst_19 : f32 to vector<16x1xf32>
      %28 = arith.divf %26, %27 : vector<16x1xf32>
      %29 = vector.broadcast %21 : vector<16x1xf32> to vector<16x32xf32>
      %30 = arith.subf %17, %29 : vector<16x32xf32>
      %cst_20 = arith.constant 9.99999974E-6 : f32
      %31 = vector.broadcast %cst_20 : f32 to vector<16x1xf32>
      %32 = arith.addf %28, %31 : vector<16x1xf32>
      %33 = math.rsqrt %32 : vector<16x1xf32>
      %34 = vector.broadcast %33 : vector<16x1xf32> to vector<16x32xf32>
      %35 = arith.mulf %30, %34 : vector<16x32xf32>
      %c0_21 = arith.constant 0 : index
      %c0_22 = arith.constant 0 : index
      %36 = vector.load %arg6[%c0_21, %c0_22] : memref<1x32xf32, #tpu.memory_space<vmem>>, vector<1x32xf32>
      %37 = vector.broadcast %36 : vector<1x32xf32> to vector<16x32xf32>
      %38 = arith.mulf %35, %37 : vector<16x32xf32>
      %c0_23 = arith.constant 0 : index
      %c0_24 = arith.constant 0 : index
      %39 = vector.load %arg7[%c0_23, %c0_24] : memref<1x32xf32, #tpu.memory_space<vmem>>, vector<1x32xf32>
      %40 = vector.broadcast %39 : vector<1x32xf32> to vector<16x32xf32>
      %41 = arith.addf %38, %40 : vector<16x32xf32>
      %c0_25 = arith.constant 0 : index
      %c0_26 = arith.constant 0 : index
      %42 = vector.load %arg8[%c0_25, %c0_26] : memref<16x32xf32, #tpu.memory_space<vmem>>, vector<16x32xf32>
      tpu.vector_store %arg8[%c0_25, %c0_26], %41 {strides = array<i32>} : memref<16x32xf32, #tpu.memory_space<vmem>>, vector<16x32xf32>,
    } else {
    }
    return
  }
  func.func @transform_0(%arg0: i32, %arg1: i32) -> (i32, i32) {
    %c0_i32 = arith.constant 0 : i32
    return %arg0, %arg1 : i32, i32
  }
  func.func @transform_1(%arg0: i32, %arg1: i32) -> (i32, i32) {
    %c0_i32 = arith.constant 0 : i32
    %c0_i32_0 = arith.constant 0 : i32
    return %arg1, %c0_i32 : i32, i32
  }
  func.func @transform_2(%arg0: i32, %arg1: i32) -> (i32, i32) {
    %c0_i32 = arith.constant 0 : i32
    %c0_i32_0 = arith.constant 0 : i32
    %c0_i32_1 = arith.constant 0 : i32
    return %c0_i32, %c0_i32_0 : i32, i32
  }
  func.func @transform_3(%arg0: i32, %arg1: i32) -> (i32, i32) {
    %c0_i32 = arith.constant 0 : i32
    %c0_i32_0 = arith.constant 0 : i32
    return %arg0, %c0_i32 : i32, i32
  }
  func.func @transform_4(%arg0: i32, %arg1: i32) -> (i32, i32) {
    %c0_i32 = arith.constant 0 : i32
    %c0_i32_0 = arith.constant 0 : i32
    %c0_i32_1 = arith.constant 0 : i32
    return %c0_i32, %c0_i32_0 : i32, i32
  }
  func.func @transform_5(%arg0: i32, %arg1: i32) -> (i32, i32) {
    %c0_i32 = arith.constant 0 : i32
    %c0_i32_0 = arith.constant 0 : i32
    %c0_i32_1 = arith.constant 0 : i32
    return %c0_i32, %c0_i32_0 : i32, i32
  }
  func.func @transform_6(%arg0: i32, %arg1: i32) -> (i32, i32) {
    %c0_i32 = arith.constant 0 : i32
    %c0_i32_0 = arith.constant 0 : i32
    return %arg0, %c0_i32 : i32, i32
  }
}

module attributes {stable_mosaic.version = 11 : i64} {
  func.func @_flash_attn_kernel(%arg0: i32, %arg1: i32, %arg2: i32, %arg3: memref<1x8x32xf32, #tpu.memory_space<vmem>>, %arg4: memref<1x8x32xf32, #tpu.memory_space<vmem>>, %arg5: memref<1x8x32xf32, #tpu.memory_space<vmem>>, %arg6: memref<1x8x32xf32, #tpu.memory_space<vmem>>, %arg7: memref<4x8x1xf32, #tpu.memory_space<vmem>>, %arg8: memref<4x8x1xf32, #tpu.memory_space<vmem>>, %arg9: memref<4x8x8xf32, #tpu.memory_space<vmem>>) attributes {dimension_semantics = [#tpu.dimension_semantics<parallel>, #tpu.dimension_semantics<parallel>, #tpu.dimension_semantics<arbitrary>], iteration_bounds = array<i64: 2, 1, 1>, scalar_prefetch = 0 : i64, scratch_operands = 3 : i64, tpu.core_type = #tpu.core_type<tc>, window_params = [{transform_indices = @transform_0, window_bounds = array<i64: 1, 8, 32>}, {transform_indices = @transform_1, window_bounds = array<i64: 1, 8, 32>}, {transform_indices = @transform_2, window_bounds = array<i64: 1, 8, 32>}, {transform_indices = @transform_3, window_bounds = array<i64: 1, 8, 32>}]} {
    %c0_i32 = arith.constant 0 : i32
    %0 = arith.cmpi eq, %arg2, %c0_i32 : i32
    %1 = arith.extui %0 : i1 to i32
    %c0_i32_0 = arith.constant 0 : i32
    %2 = arith.cmpi ne, %1, %c0_i32_0 : i32
    scf.if %2 {
      %cst_123 = arith.constant 0xFF800000 : f32
      %170 = vector.broadcast %cst_123 : f32 to vector<4x8x1xf32>
      %c0_124 = arith.constant 0 : index
      %c0_125 = arith.constant 0 : index
      %c0_126 = arith.constant 0 : index
      %171 = vector.load %arg7[%c0_124, %c0_125, %c0_126] : memref<4x8x1xf32, #tpu.memory_space<vmem>>, vector<4x8x1xf32>
      tpu.vector_store %arg7[%c0_124, %c0_125, %c0_126], %170 {strides = array<i32>} : memref<4x8x1xf32, #tpu.memory_space<vmem>>, vector<4x8x1xf32>,
      %cst_127 = arith.constant 0.000000e+00 : f32
      %172 = vector.broadcast %cst_127 : f32 to vector<4x8x1xf32>
      %c0_128 = arith.constant 0 : index
      %c0_129 = arith.constant 0 : index
      %c0_130 = arith.constant 0 : index
      %173 = vector.load %arg8[%c0_128, %c0_129, %c0_130] : memref<4x8x1xf32, #tpu.memory_space<vmem>>, vector<4x8x1xf32>
      tpu.vector_store %arg8[%c0_128, %c0_129, %c0_130], %172 {strides = array<i32>} : memref<4x8x1xf32, #tpu.memory_space<vmem>>, vector<4x8x1xf32>,
      %cst_131 = arith.constant 0.000000e+00 : f32
      %174 = vector.broadcast %cst_131 : f32 to vector<4x8x8xf32>
      %c0_132 = arith.constant 0 : index
      %c0_133 = arith.constant 0 : index
      %c0_134 = arith.constant 0 : index
      %175 = vector.load %arg9[%c0_132, %c0_133, %c0_134] : memref<4x8x8xf32, #tpu.memory_space<vmem>>, vector<4x8x8xf32>
      tpu.vector_store %arg9[%c0_132, %c0_133, %c0_134], %174 {strides = array<i32>} : memref<4x8x8xf32, #tpu.memory_space<vmem>>, vector<4x8x8xf32>,
    } else {
    }
    %c0 = arith.constant 0 : index
    %c0_1 = arith.constant 0 : index
    %c0_2 = arith.constant 0 : index
    %3 = vector.load %arg3[%c0, %c0_1, %c0_2] : memref<1x8x32xf32, #tpu.memory_space<vmem>>, vector<1x8x8xf32>
    %4 = vector.shape_cast %3 : vector<1x8x8xf32> to vector<8x8xf32>
    %c0_3 = arith.constant 0 : index
    %c0_4 = arith.constant 0 : index
    %c0_5 = arith.constant 0 : index
    %5 = vector.load %arg4[%c0_3, %c0_4, %c0_5] : memref<1x8x32xf32, #tpu.memory_space<vmem>>, vector<1x8x8xf32>
    %6 = vector.shape_cast %5 : vector<1x8x8xf32> to vector<8x8xf32>
    %c0_6 = arith.constant 0 : index
    %c0_7 = arith.constant 0 : index
    %c0_8 = arith.constant 0 : index
    %7 = vector.load %arg5[%c0_6, %c0_7, %c0_8] : memref<1x8x32xf32, #tpu.memory_space<vmem>>, vector<1x8x8xf32>
    %8 = vector.shape_cast %7 : vector<1x8x8xf32> to vector<8x8xf32>
    %9 = tpu.transpose %6, [1, 0] : vector<8x8xf32> -> vector<8x8xf32>
    %cst = arith.constant dense<0.000000e+00> : vector<8x8xf32>
    %10 = tpu.matmul %4, %9, %cst {dimension_numbers = #tpu.dot_dimension_numbers<[1], [0], [0], [1], [0, 0, 1, 1], [], []>} : vector<8x8xf32>, vector<8x8xf32>, vector<8x8xf32> -> vector<8x8xf32>
    %cst_9 = arith.constant 0.353553385 : f32
    %11 = vector.broadcast %cst_9 : f32 to vector<8x8xf32>
    %12 = arith.mulf %10, %11 : vector<8x8xf32>
    %c0_10 = arith.constant 0 : index
    %c0_11 = arith.constant 0 : index
    %c0_12 = arith.constant 0 : index
    %13 = vector.load %arg7[%c0_10, %c0_11, %c0_12] : memref<4x8x1xf32, #tpu.memory_space<vmem>>, vector<1x8x1xf32>
    %14 = vector.shape_cast %13 : vector<1x8x1xf32> to vector<8x1xf32>
    %c0_13 = arith.constant 0 : index
    %c0_14 = arith.constant 0 : index
    %c0_15 = arith.constant 0 : index
    %15 = vector.load %arg8[%c0_13, %c0_14, %c0_15] : memref<4x8x1xf32, #tpu.memory_space<vmem>>, vector<1x8x1xf32>
    %16 = vector.shape_cast %15 : vector<1x8x1xf32> to vector<8x1xf32>
    %c0_16 = arith.constant 0 : index
    %c0_17 = arith.constant 0 : index
    %c0_18 = arith.constant 0 : index
    %17 = vector.load %arg9[%c0_16, %c0_17, %c0_18] : memref<4x8x8xf32, #tpu.memory_space<vmem>>, vector<1x8x8xf32>
    %18 = vector.shape_cast %17 : vector<1x8x8xf32> to vector<8x8xf32>
    %cst_19 = arith.constant dense<0xFF800000> : vector<8xf32>
    %19 = vector.multi_reduction <maximumf>, %12, %cst_19 [1] : vector<8x8xf32> to vector<8xf32>
    %20 = vector.shape_cast %19 : vector<8xf32> to vector<8x1xf32>
    %21 = arith.maximumf %14, %20 : vector<8x1xf32>
    %22 = arith.subf %14, %21 : vector<8x1xf32>
    %23 = math.exp %22 : vector<8x1xf32>
    %24 = vector.broadcast %21 : vector<8x1xf32> to vector<8x8xf32>
    %25 = arith.subf %12, %24 : vector<8x8xf32>
    %26 = math.exp %25 : vector<8x8xf32>
    %27 = arith.mulf %23, %16 : vector<8x1xf32>
    %cst_20 = arith.constant dense<0.000000e+00> : vector<8xf32>
    %28 = vector.multi_reduction <add>, %26, %cst_20 [1] : vector<8x8xf32> to vector<8xf32>
    %29 = vector.shape_cast %28 : vector<8xf32> to vector<8x1xf32>
    %30 = arith.addf %27, %29 : vector<8x1xf32>
    %31 = vector.broadcast %23 : vector<8x1xf32> to vector<8x8xf32>
    %32 = arith.mulf %31, %18 : vector<8x8xf32>
    %cst_21 = arith.constant dense<0.000000e+00> : vector<8x8xf32>
    %33 = tpu.matmul %26, %8, %cst_21 {dimension_numbers = #tpu.dot_dimension_numbers<[1], [0], [0], [1], [0, 0, 1, 1], [], []>} : vector<8x8xf32>, vector<8x8xf32>, vector<8x8xf32> -> vector<8x8xf32>
    %34 = arith.addf %32, %33 : vector<8x8xf32>
    %c0_22 = arith.constant 0 : index
    %c0_23 = arith.constant 0 : index
    %c0_24 = arith.constant 0 : index
    %35 = vector.load %arg7[%c0_22, %c0_23, %c0_24] : memref<4x8x1xf32, #tpu.memory_space<vmem>>, vector<1x8x1xf32>
    %36 = vector.shape_cast %35 : vector<1x8x1xf32> to vector<8x1xf32>
    %37 = vector.shape_cast %21 : vector<8x1xf32> to vector<1x8x1xf32>
    tpu.vector_store %arg7[%c0_22, %c0_23, %c0_24], %37 {strides = array<i32>} : memref<4x8x1xf32, #tpu.memory_space<vmem>>, vector<1x8x1xf32>,
    %c0_25 = arith.constant 0 : index
    %c0_26 = arith.constant 0 : index
    %c0_27 = arith.constant 0 : index
    %38 = vector.load %arg8[%c0_25, %c0_26, %c0_27] : memref<4x8x1xf32, #tpu.memory_space<vmem>>, vector<1x8x1xf32>
    %39 = vector.shape_cast %38 : vector<1x8x1xf32> to vector<8x1xf32>
    %40 = vector.shape_cast %30 : vector<8x1xf32> to vector<1x8x1xf32>
    tpu.vector_store %arg8[%c0_25, %c0_26, %c0_27], %40 {strides = array<i32>} : memref<4x8x1xf32, #tpu.memory_space<vmem>>, vector<1x8x1xf32>,
    %c0_28 = arith.constant 0 : index
    %c0_29 = arith.constant 0 : index
    %c0_30 = arith.constant 0 : index
    %41 = vector.load %arg9[%c0_28, %c0_29, %c0_30] : memref<4x8x8xf32, #tpu.memory_space<vmem>>, vector<1x8x8xf32>
    %42 = vector.shape_cast %41 : vector<1x8x8xf32> to vector<8x8xf32>
    %43 = vector.shape_cast %34 : vector<8x8xf32> to vector<1x8x8xf32>
    tpu.vector_store %arg9[%c0_28, %c0_29, %c0_30], %43 {strides = array<i32>} : memref<4x8x8xf32, #tpu.memory_space<vmem>>, vector<1x8x8xf32>,
    %c0_31 = arith.constant 0 : index
    %c0_32 = arith.constant 0 : index
    %c8 = arith.constant 8 : index
    %44 = vector.load %arg3[%c0_31, %c0_32, %c8] : memref<1x8x32xf32, #tpu.memory_space<vmem>>, vector<1x8x8xf32>
    %45 = vector.shape_cast %44 : vector<1x8x8xf32> to vector<8x8xf32>
    %c0_33 = arith.constant 0 : index
    %c0_34 = arith.constant 0 : index
    %c8_35 = arith.constant 8 : index
    %46 = vector.load %arg4[%c0_33, %c0_34, %c8_35] : memref<1x8x32xf32, #tpu.memory_space<vmem>>, vector<1x8x8xf32>
    %47 = vector.shape_cast %46 : vector<1x8x8xf32> to vector<8x8xf32>
    %c0_36 = arith.constant 0 : index
    %c0_37 = arith.constant 0 : index
    %c8_38 = arith.constant 8 : index
    %48 = vector.load %arg5[%c0_36, %c0_37, %c8_38] : memref<1x8x32xf32, #tpu.memory_space<vmem>>, vector<1x8x8xf32>
    %49 = vector.shape_cast %48 : vector<1x8x8xf32> to vector<8x8xf32>
    %50 = tpu.transpose %47, [1, 0] : vector<8x8xf32> -> vector<8x8xf32>
    %cst_39 = arith.constant dense<0.000000e+00> : vector<8x8xf32>
    %51 = tpu.matmul %45, %50, %cst_39 {dimension_numbers = #tpu.dot_dimension_numbers<[1], [0], [0], [1], [0, 0, 1, 1], [], []>} : vector<8x8xf32>, vector<8x8xf32>, vector<8x8xf32> -> vector<8x8xf32>
    %cst_40 = arith.constant 0.353553385 : f32
    %52 = vector.broadcast %cst_40 : f32 to vector<8x8xf32>
    %53 = arith.mulf %51, %52 : vector<8x8xf32>
    %c1 = arith.constant 1 : index
    %c0_41 = arith.constant 0 : index
    %c0_42 = arith.constant 0 : index
    %54 = vector.load %arg7[%c1, %c0_41, %c0_42] : memref<4x8x1xf32, #tpu.memory_space<vmem>>, vector<1x8x1xf32>
    %55 = vector.shape_cast %54 : vector<1x8x1xf32> to vector<8x1xf32>
    %c1_43 = arith.constant 1 : index
    %c0_44 = arith.constant 0 : index
    %c0_45 = arith.constant 0 : index
    %56 = vector.load %arg8[%c1_43, %c0_44, %c0_45] : memref<4x8x1xf32, #tpu.memory_space<vmem>>, vector<1x8x1xf32>
    %57 = vector.shape_cast %56 : vector<1x8x1xf32> to vector<8x1xf32>
    %c1_46 = arith.constant 1 : index
    %c0_47 = arith.constant 0 : index
    %c0_48 = arith.constant 0 : index
    %58 = vector.load %arg9[%c1_46, %c0_47, %c0_48] : memref<4x8x8xf32, #tpu.memory_space<vmem>>, vector<1x8x8xf32>
    %59 = vector.shape_cast %58 : vector<1x8x8xf32> to vector<8x8xf32>
    %cst_49 = arith.constant dense<0xFF800000> : vector<8xf32>
    %60 = vector.multi_reduction <maximumf>, %53, %cst_49 [1] : vector<8x8xf32> to vector<8xf32>
    %61 = vector.shape_cast %60 : vector<8xf32> to vector<8x1xf32>
    %62 = arith.maximumf %55, %61 : vector<8x1xf32>
    %63 = arith.subf %55, %62 : vector<8x1xf32>
    %64 = math.exp %63 : vector<8x1xf32>
    %65 = vector.broadcast %62 : vector<8x1xf32> to vector<8x8xf32>
    %66 = arith.subf %53, %65 : vector<8x8xf32>
    %67 = math.exp %66 : vector<8x8xf32>
    %68 = arith.mulf %64, %57 : vector<8x1xf32>
    %cst_50 = arith.constant dense<0.000000e+00> : vector<8xf32>
    %69 = vector.multi_reduction <add>, %67, %cst_50 [1] : vector<8x8xf32> to vector<8xf32>
    %70 = vector.shape_cast %69 : vector<8xf32> to vector<8x1xf32>
    %71 = arith.addf %68, %70 : vector<8x1xf32>
    %72 = vector.broadcast %64 : vector<8x1xf32> to vector<8x8xf32>
    %73 = arith.mulf %72, %59 : vector<8x8xf32>
    %cst_51 = arith.constant dense<0.000000e+00> : vector<8x8xf32>
    %74 = tpu.matmul %67, %49, %cst_51 {dimension_numbers = #tpu.dot_dimension_numbers<[1], [0], [0], [1], [0, 0, 1, 1], [], []>} : vector<8x8xf32>, vector<8x8xf32>, vector<8x8xf32> -> vector<8x8xf32>
    %75 = arith.addf %73, %74 : vector<8x8xf32>
    %c1_52 = arith.constant 1 : index
    %c0_53 = arith.constant 0 : index
    %c0_54 = arith.constant 0 : index
    %76 = vector.load %arg7[%c1_52, %c0_53, %c0_54] : memref<4x8x1xf32, #tpu.memory_space<vmem>>, vector<1x8x1xf32>
    %77 = vector.shape_cast %76 : vector<1x8x1xf32> to vector<8x1xf32>
    %78 = vector.shape_cast %62 : vector<8x1xf32> to vector<1x8x1xf32>
    tpu.vector_store %arg7[%c1_52, %c0_53, %c0_54], %78 {strides = array<i32>} : memref<4x8x1xf32, #tpu.memory_space<vmem>>, vector<1x8x1xf32>,
    %c1_55 = arith.constant 1 : index
    %c0_56 = arith.constant 0 : index
    %c0_57 = arith.constant 0 : index
    %79 = vector.load %arg8[%c1_55, %c0_56, %c0_57] : memref<4x8x1xf32, #tpu.memory_space<vmem>>, vector<1x8x1xf32>
    %80 = vector.shape_cast %79 : vector<1x8x1xf32> to vector<8x1xf32>
    %81 = vector.shape_cast %71 : vector<8x1xf32> to vector<1x8x1xf32>
    tpu.vector_store %arg8[%c1_55, %c0_56, %c0_57], %81 {strides = array<i32>} : memref<4x8x1xf32, #tpu.memory_space<vmem>>, vector<1x8x1xf32>,
    %c1_58 = arith.constant 1 : index
    %c0_59 = arith.constant 0 : index
    %c0_60 = arith.constant 0 : index
    %82 = vector.load %arg9[%c1_58, %c0_59, %c0_60] : memref<4x8x8xf32, #tpu.memory_space<vmem>>, vector<1x8x8xf32>
    %83 = vector.shape_cast %82 : vector<1x8x8xf32> to vector<8x8xf32>
    %84 = vector.shape_cast %75 : vector<8x8xf32> to vector<1x8x8xf32>
    tpu.vector_store %arg9[%c1_58, %c0_59, %c0_60], %84 {strides = array<i32>} : memref<4x8x8xf32, #tpu.memory_space<vmem>>, vector<1x8x8xf32>,
    %c0_61 = arith.constant 0 : index
    %c0_62 = arith.constant 0 : index
    %c16 = arith.constant 16 : index
    %85 = vector.load %arg3[%c0_61, %c0_62, %c16] : memref<1x8x32xf32, #tpu.memory_space<vmem>>, vector<1x8x8xf32>
    %86 = vector.shape_cast %85 : vector<1x8x8xf32> to vector<8x8xf32>
    %c0_63 = arith.constant 0 : index
    %c0_64 = arith.constant 0 : index
    %c16_65 = arith.constant 16 : index
    %87 = vector.load %arg4[%c0_63, %c0_64, %c16_65] : memref<1x8x32xf32, #tpu.memory_space<vmem>>, vector<1x8x8xf32>
    %88 = vector.shape_cast %87 : vector<1x8x8xf32> to vector<8x8xf32>
    %c0_66 = arith.constant 0 : index
    %c0_67 = arith.constant 0 : index
    %c16_68 = arith.constant 16 : index
    %89 = vector.load %arg5[%c0_66, %c0_67, %c16_68] : memref<1x8x32xf32, #tpu.memory_space<vmem>>, vector<1x8x8xf32>
    %90 = vector.shape_cast %89 : vector<1x8x8xf32> to vector<8x8xf32>
    %91 = tpu.transpose %88, [1, 0] : vector<8x8xf32> -> vector<8x8xf32>
    %cst_69 = arith.constant dense<0.000000e+00> : vector<8x8xf32>
    %92 = tpu.matmul %86, %91, %cst_69 {dimension_numbers = #tpu.dot_dimension_numbers<[1], [0], [0], [1], [0, 0, 1, 1], [], []>} : vector<8x8xf32>, vector<8x8xf32>, vector<8x8xf32> -> vector<8x8xf32>
    %cst_70 = arith.constant 0.353553385 : f32
    %93 = vector.broadcast %cst_70 : f32 to vector<8x8xf32>
    %94 = arith.mulf %92, %93 : vector<8x8xf32>
    %c2 = arith.constant 2 : index
    %c0_71 = arith.constant 0 : index
    %c0_72 = arith.constant 0 : index
    %95 = vector.load %arg7[%c2, %c0_71, %c0_72] : memref<4x8x1xf32, #tpu.memory_space<vmem>>, vector<1x8x1xf32>
    %96 = vector.shape_cast %95 : vector<1x8x1xf32> to vector<8x1xf32>
    %c2_73 = arith.constant 2 : index
    %c0_74 = arith.constant 0 : index
    %c0_75 = arith.constant 0 : index
    %97 = vector.load %arg8[%c2_73, %c0_74, %c0_75] : memref<4x8x1xf32, #tpu.memory_space<vmem>>, vector<1x8x1xf32>
    %98 = vector.shape_cast %97 : vector<1x8x1xf32> to vector<8x1xf32>
    %c2_76 = arith.constant 2 : index
    %c0_77 = arith.constant 0 : index
    %c0_78 = arith.constant 0 : index
    %99 = vector.load %arg9[%c2_76, %c0_77, %c0_78] : memref<4x8x8xf32, #tpu.memory_space<vmem>>, vector<1x8x8xf32>
    %100 = vector.shape_cast %99 : vector<1x8x8xf32> to vector<8x8xf32>
    %cst_79 = arith.constant dense<0xFF800000> : vector<8xf32>
    %101 = vector.multi_reduction <maximumf>, %94, %cst_79 [1] : vector<8x8xf32> to vector<8xf32>
    %102 = vector.shape_cast %101 : vector<8xf32> to vector<8x1xf32>
    %103 = arith.maximumf %96, %102 : vector<8x1xf32>
    %104 = arith.subf %96, %103 : vector<8x1xf32>
    %105 = math.exp %104 : vector<8x1xf32>
    %106 = vector.broadcast %103 : vector<8x1xf32> to vector<8x8xf32>
    %107 = arith.subf %94, %106 : vector<8x8xf32>
    %108 = math.exp %107 : vector<8x8xf32>
    %109 = arith.mulf %105, %98 : vector<8x1xf32>
    %cst_80 = arith.constant dense<0.000000e+00> : vector<8xf32>
    %110 = vector.multi_reduction <add>, %108, %cst_80 [1] : vector<8x8xf32> to vector<8xf32>
    %111 = vector.shape_cast %110 : vector<8xf32> to vector<8x1xf32>
    %112 = arith.addf %109, %111 : vector<8x1xf32>
    %113 = vector.broadcast %105 : vector<8x1xf32> to vector<8x8xf32>
    %114 = arith.mulf %113, %100 : vector<8x8xf32>
    %cst_81 = arith.constant dense<0.000000e+00> : vector<8x8xf32>
    %115 = tpu.matmul %108, %90, %cst_81 {dimension_numbers = #tpu.dot_dimension_numbers<[1], [0], [0], [1], [0, 0, 1, 1], [], []>} : vector<8x8xf32>, vector<8x8xf32>, vector<8x8xf32> -> vector<8x8xf32>
    %116 = arith.addf %114, %115 : vector<8x8xf32>
    %c2_82 = arith.constant 2 : index
    %c0_83 = arith.constant 0 : index
    %c0_84 = arith.constant 0 : index
    %117 = vector.load %arg7[%c2_82, %c0_83, %c0_84] : memref<4x8x1xf32, #tpu.memory_space<vmem>>, vector<1x8x1xf32>
    %118 = vector.shape_cast %117 : vector<1x8x1xf32> to vector<8x1xf32>
    %119 = vector.shape_cast %103 : vector<8x1xf32> to vector<1x8x1xf32>
    tpu.vector_store %arg7[%c2_82, %c0_83, %c0_84], %119 {strides = array<i32>} : memref<4x8x1xf32, #tpu.memory_space<vmem>>, vector<1x8x1xf32>,
    %c2_85 = arith.constant 2 : index
    %c0_86 = arith.constant 0 : index
    %c0_87 = arith.constant 0 : index
    %120 = vector.load %arg8[%c2_85, %c0_86, %c0_87] : memref<4x8x1xf32, #tpu.memory_space<vmem>>, vector<1x8x1xf32>
    %121 = vector.shape_cast %120 : vector<1x8x1xf32> to vector<8x1xf32>
    %122 = vector.shape_cast %112 : vector<8x1xf32> to vector<1x8x1xf32>
    tpu.vector_store %arg8[%c2_85, %c0_86, %c0_87], %122 {strides = array<i32>} : memref<4x8x1xf32, #tpu.memory_space<vmem>>, vector<1x8x1xf32>,
    %c2_88 = arith.constant 2 : index
    %c0_89 = arith.constant 0 : index
    %c0_90 = arith.constant 0 : index
    %123 = vector.load %arg9[%c2_88, %c0_89, %c0_90] : memref<4x8x8xf32, #tpu.memory_space<vmem>>, vector<1x8x8xf32>
    %124 = vector.shape_cast %123 : vector<1x8x8xf32> to vector<8x8xf32>
    %125 = vector.shape_cast %116 : vector<8x8xf32> to vector<1x8x8xf32>
    tpu.vector_store %arg9[%c2_88, %c0_89, %c0_90], %125 {strides = array<i32>} : memref<4x8x8xf32, #tpu.memory_space<vmem>>, vector<1x8x8xf32>,
    %c0_91 = arith.constant 0 : index
    %c0_92 = arith.constant 0 : index
    %c24 = arith.constant 24 : index
    %126 = vector.load %arg3[%c0_91, %c0_92, %c24] : memref<1x8x32xf32, #tpu.memory_space<vmem>>, vector<1x8x8xf32>
    %127 = vector.shape_cast %126 : vector<1x8x8xf32> to vector<8x8xf32>
    %c0_93 = arith.constant 0 : index
    %c0_94 = arith.constant 0 : index
    %c24_95 = arith.constant 24 : index
    %128 = vector.load %arg4[%c0_93, %c0_94, %c24_95] : memref<1x8x32xf32, #tpu.memory_space<vmem>>, vector<1x8x8xf32>
    %129 = vector.shape_cast %128 : vector<1x8x8xf32> to vector<8x8xf32>
    %c0_96 = arith.constant 0 : index
    %c0_97 = arith.constant 0 : index
    %c24_98 = arith.constant 24 : index
    %130 = vector.load %arg5[%c0_96, %c0_97, %c24_98] : memref<1x8x32xf32, #tpu.memory_space<vmem>>, vector<1x8x8xf32>
    %131 = vector.shape_cast %130 : vector<1x8x8xf32> to vector<8x8xf32>
    %132 = tpu.transpose %129, [1, 0] : vector<8x8xf32> -> vector<8x8xf32>
    %cst_99 = arith.constant dense<0.000000e+00> : vector<8x8xf32>
    %133 = tpu.matmul %127, %132, %cst_99 {dimension_numbers = #tpu.dot_dimension_numbers<[1], [0], [0], [1], [0, 0, 1, 1], [], []>} : vector<8x8xf32>, vector<8x8xf32>, vector<8x8xf32> -> vector<8x8xf32>
    %cst_100 = arith.constant 0.353553385 : f32
    %134 = vector.broadcast %cst_100 : f32 to vector<8x8xf32>
    %135 = arith.mulf %133, %134 : vector<8x8xf32>
    %c3 = arith.constant 3 : index
    %c0_101 = arith.constant 0 : index
    %c0_102 = arith.constant 0 : index
    %136 = vector.load %arg7[%c3, %c0_101, %c0_102] : memref<4x8x1xf32, #tpu.memory_space<vmem>>, vector<1x8x1xf32>
    %137 = vector.shape_cast %136 : vector<1x8x1xf32> to vector<8x1xf32>
    %c3_103 = arith.constant 3 : index
    %c0_104 = arith.constant 0 : index
    %c0_105 = arith.constant 0 : index
    %138 = vector.load %arg8[%c3_103, %c0_104, %c0_105] : memref<4x8x1xf32, #tpu.memory_space<vmem>>, vector<1x8x1xf32>
    %139 = vector.shape_cast %138 : vector<1x8x1xf32> to vector<8x1xf32>
    %c3_106 = arith.constant 3 : index
    %c0_107 = arith.constant 0 : index
    %c0_108 = arith.constant 0 : index
    %140 = vector.load %arg9[%c3_106, %c0_107, %c0_108] : memref<4x8x8xf32, #tpu.memory_space<vmem>>, vector<1x8x8xf32>
    %141 = vector.shape_cast %140 : vector<1x8x8xf32> to vector<8x8xf32>
    %cst_109 = arith.constant dense<0xFF800000> : vector<8xf32>
    %142 = vector.multi_reduction <maximumf>, %135, %cst_109 [1] : vector<8x8xf32> to vector<8xf32>
    %143 = vector.shape_cast %142 : vector<8xf32> to vector<8x1xf32>
    %144 = arith.maximumf %137, %143 : vector<8x1xf32>
    %145 = arith.subf %137, %144 : vector<8x1xf32>
    %146 = math.exp %145 : vector<8x1xf32>
    %147 = vector.broadcast %144 : vector<8x1xf32> to vector<8x8xf32>
    %148 = arith.subf %135, %147 : vector<8x8xf32>
    %149 = math.exp %148 : vector<8x8xf32>
    %150 = arith.mulf %146, %139 : vector<8x1xf32>
    %cst_110 = arith.constant dense<0.000000e+00> : vector<8xf32>
    %151 = vector.multi_reduction <add>, %149, %cst_110 [1] : vector<8x8xf32> to vector<8xf32>
    %152 = vector.shape_cast %151 : vector<8xf32> to vector<8x1xf32>
    %153 = arith.addf %150, %152 : vector<8x1xf32>
    %154 = vector.broadcast %146 : vector<8x1xf32> to vector<8x8xf32>
    %155 = arith.mulf %154, %141 : vector<8x8xf32>
    %cst_111 = arith.constant dense<0.000000e+00> : vector<8x8xf32>
    %156 = tpu.matmul %149, %131, %cst_111 {dimension_numbers = #tpu.dot_dimension_numbers<[1], [0], [0], [1], [0, 0, 1, 1], [], []>} : vector<8x8xf32>, vector<8x8xf32>, vector<8x8xf32> -> vector<8x8xf32>
    %157 = arith.addf %155, %156 : vector<8x8xf32>
    %c3_112 = arith.constant 3 : index
    %c0_113 = arith.constant 0 : index
    %c0_114 = arith.constant 0 : index
    %158 = vector.load %arg7[%c3_112, %c0_113, %c0_114] : memref<4x8x1xf32, #tpu.memory_space<vmem>>, vector<1x8x1xf32>
    %159 = vector.shape_cast %158 : vector<1x8x1xf32> to vector<8x1xf32>
    %160 = vector.shape_cast %144 : vector<8x1xf32> to vector<1x8x1xf32>
    tpu.vector_store %arg7[%c3_112, %c0_113, %c0_114], %160 {strides = array<i32>} : memref<4x8x1xf32, #tpu.memory_space<vmem>>, vector<1x8x1xf32>,
    %c3_115 = arith.constant 3 : index
    %c0_116 = arith.constant 0 : index
    %c0_117 = arith.constant 0 : index
    %161 = vector.load %arg8[%c3_115, %c0_116, %c0_117] : memref<4x8x1xf32, #tpu.memory_space<vmem>>, vector<1x8x1xf32>
    %162 = vector.shape_cast %161 : vector<1x8x1xf32> to vector<8x1xf32>
    %163 = vector.shape_cast %153 : vector<8x1xf32> to vector<1x8x1xf32>
    tpu.vector_store %arg8[%c3_115, %c0_116, %c0_117], %163 {strides = array<i32>} : memref<4x8x1xf32, #tpu.memory_space<vmem>>, vector<1x8x1xf32>,
    %c3_118 = arith.constant 3 : index
    %c0_119 = arith.constant 0 : index
    %c0_120 = arith.constant 0 : index
    %164 = vector.load %arg9[%c3_118, %c0_119, %c0_120] : memref<4x8x8xf32, #tpu.memory_space<vmem>>, vector<1x8x8xf32>
    %165 = vector.shape_cast %164 : vector<1x8x8xf32> to vector<8x8xf32>
    %166 = vector.shape_cast %157 : vector<8x8xf32> to vector<1x8x8xf32>
    tpu.vector_store %arg9[%c3_118, %c0_119, %c0_120], %166 {strides = array<i32>} : memref<4x8x8xf32, #tpu.memory_space<vmem>>, vector<1x8x8xf32>,
    %c0_i32_121 = arith.constant 0 : i32
    %167 = arith.cmpi eq, %arg2, %c0_i32_121 : i32
    %168 = arith.extui %167 : i1 to i32
    %c0_i32_122 = arith.constant 0 : i32
    %169 = arith.cmpi ne, %168, %c0_i32_122 : i32
    scf.if %169 {
      %c0_123 = arith.constant 0 : index
      %c0_124 = arith.constant 0 : index
      %c0_125 = arith.constant 0 : index
      %170 = vector.load %arg8[%c0_123, %c0_124, %c0_125] : memref<4x8x1xf32, #tpu.memory_space<vmem>>, vector<1x8x1xf32>
      %171 = vector.shape_cast %170 : vector<1x8x1xf32> to vector<8x1xf32>
      %172 = tpu.reciprocal %171 {approx = true} : vector<8x1xf32> -> vector<8x1xf32>
      %c0_126 = arith.constant 0 : index
      %c0_127 = arith.constant 0 : index
      %c0_128 = arith.constant 0 : index
      %173 = vector.load %arg9[%c0_126, %c0_127, %c0_128] : memref<4x8x8xf32, #tpu.memory_space<vmem>>, vector<1x8x8xf32>
      %174 = vector.shape_cast %173 : vector<1x8x8xf32> to vector<8x8xf32>
      %175 = vector.broadcast %172 : vector<8x1xf32> to vector<8x8xf32>
      %176 = arith.mulf %174, %175 : vector<8x8xf32>
      %c0_129 = arith.constant 0 : index
      %c0_130 = arith.constant 0 : index
      %c0_131 = arith.constant 0 : index
      %177 = vector.load %arg6[%c0_129, %c0_130, %c0_131] : memref<1x8x32xf32, #tpu.memory_space<vmem>>, vector<1x8x8xf32>
      %178 = vector.shape_cast %177 : vector<1x8x8xf32> to vector<8x8xf32>
      %179 = vector.shape_cast %176 : vector<8x8xf32> to vector<1x8x8xf32>
      tpu.vector_store %arg6[%c0_129, %c0_130, %c0_131], %179 {strides = array<i32>} : memref<1x8x32xf32, #tpu.memory_space<vmem>>, vector<1x8x8xf32>,
      %c1_132 = arith.constant 1 : index
      %c0_133 = arith.constant 0 : index
      %c0_134 = arith.constant 0 : index
      %180 = vector.load %arg8[%c1_132, %c0_133, %c0_134] : memref<4x8x1xf32, #tpu.memory_space<vmem>>, vector<1x8x1xf32>
      %181 = vector.shape_cast %180 : vector<1x8x1xf32> to vector<8x1xf32>
      %182 = tpu.reciprocal %181 {approx = true} : vector<8x1xf32> -> vector<8x1xf32>
      %c1_135 = arith.constant 1 : index
      %c0_136 = arith.constant 0 : index
      %c0_137 = arith.constant 0 : index
      %183 = vector.load %arg9[%c1_135, %c0_136, %c0_137] : memref<4x8x8xf32, #tpu.memory_space<vmem>>, vector<1x8x8xf32>
      %184 = vector.shape_cast %183 : vector<1x8x8xf32> to vector<8x8xf32>
      %185 = vector.broadcast %182 : vector<8x1xf32> to vector<8x8xf32>
      %186 = arith.mulf %184, %185 : vector<8x8xf32>
      %c0_138 = arith.constant 0 : index
      %c0_139 = arith.constant 0 : index
      %c8_140 = arith.constant 8 : index
      %187 = vector.load %arg6[%c0_138, %c0_139, %c8_140] : memref<1x8x32xf32, #tpu.memory_space<vmem>>, vector<1x8x8xf32>
      %188 = vector.shape_cast %187 : vector<1x8x8xf32> to vector<8x8xf32>
      %189 = vector.shape_cast %186 : vector<8x8xf32> to vector<1x8x8xf32>
      tpu.vector_store %arg6[%c0_138, %c0_139, %c8_140], %189 {strides = array<i32>} : memref<1x8x32xf32, #tpu.memory_space<vmem>>, vector<1x8x8xf32>,
      %c2_141 = arith.constant 2 : index
      %c0_142 = arith.constant 0 : index
      %c0_143 = arith.constant 0 : index
      %190 = vector.load %arg8[%c2_141, %c0_142, %c0_143] : memref<4x8x1xf32, #tpu.memory_space<vmem>>, vector<1x8x1xf32>
      %191 = vector.shape_cast %190 : vector<1x8x1xf32> to vector<8x1xf32>
      %192 = tpu.reciprocal %191 {approx = true} : vector<8x1xf32> -> vector<8x1xf32>
      %c2_144 = arith.constant 2 : index
      %c0_145 = arith.constant 0 : index
      %c0_146 = arith.constant 0 : index
      %193 = vector.load %arg9[%c2_144, %c0_145, %c0_146] : memref<4x8x8xf32, #tpu.memory_space<vmem>>, vector<1x8x8xf32>
      %194 = vector.shape_cast %193 : vector<1x8x8xf32> to vector<8x8xf32>
      %195 = vector.broadcast %192 : vector<8x1xf32> to vector<8x8xf32>
      %196 = arith.mulf %194, %195 : vector<8x8xf32>
      %c0_147 = arith.constant 0 : index
      %c0_148 = arith.constant 0 : index
      %c16_149 = arith.constant 16 : index
      %197 = vector.load %arg6[%c0_147, %c0_148, %c16_149] : memref<1x8x32xf32, #tpu.memory_space<vmem>>, vector<1x8x8xf32>
      %198 = vector.shape_cast %197 : vector<1x8x8xf32> to vector<8x8xf32>
      %199 = vector.shape_cast %196 : vector<8x8xf32> to vector<1x8x8xf32>
      tpu.vector_store %arg6[%c0_147, %c0_148, %c16_149], %199 {strides = array<i32>} : memref<1x8x32xf32, #tpu.memory_space<vmem>>, vector<1x8x8xf32>,
      %c3_150 = arith.constant 3 : index
      %c0_151 = arith.constant 0 : index
      %c0_152 = arith.constant 0 : index
      %200 = vector.load %arg8[%c3_150, %c0_151, %c0_152] : memref<4x8x1xf32, #tpu.memory_space<vmem>>, vector<1x8x1xf32>
      %201 = vector.shape_cast %200 : vector<1x8x1xf32> to vector<8x1xf32>
      %202 = tpu.reciprocal %201 {approx = true} : vector<8x1xf32> -> vector<8x1xf32>
      %c3_153 = arith.constant 3 : index
      %c0_154 = arith.constant 0 : index
      %c0_155 = arith.constant 0 : index
      %203 = vector.load %arg9[%c3_153, %c0_154, %c0_155] : memref<4x8x8xf32, #tpu.memory_space<vmem>>, vector<1x8x8xf32>
      %204 = vector.shape_cast %203 : vector<1x8x8xf32> to vector<8x8xf32>
      %205 = vector.broadcast %202 : vector<8x1xf32> to vector<8x8xf32>
      %206 = arith.mulf %204, %205 : vector<8x8xf32>
      %c0_156 = arith.constant 0 : index
      %c0_157 = arith.constant 0 : index
      %c24_158 = arith.constant 24 : index
      %207 = vector.load %arg6[%c0_156, %c0_157, %c24_158] : memref<1x8x32xf32, #tpu.memory_space<vmem>>, vector<1x8x8xf32>
      %208 = vector.shape_cast %207 : vector<1x8x8xf32> to vector<8x8xf32>
      %209 = vector.shape_cast %206 : vector<8x8xf32> to vector<1x8x8xf32>
      tpu.vector_store %arg6[%c0_156, %c0_157, %c24_158], %209 {strides = array<i32>} : memref<1x8x32xf32, #tpu.memory_space<vmem>>, vector<1x8x8xf32>,
    } else {
    }
    return
  }
  func.func @transform_0(%arg0: i32, %arg1: i32, %arg2: i32) -> (i32, i32, i32) {
    %c0_i32 = arith.constant 0 : i32
    %c0_i32_0 = arith.constant 0 : i32
    return %arg0, %arg1, %c0_i32 : i32, i32, i32
  }
  func.func @transform_1(%arg0: i32, %arg1: i32, %arg2: i32) -> (i32, i32, i32) {
    %c0_i32 = arith.constant 0 : i32
    %c0_i32_0 = arith.constant 0 : i32
    return %arg0, %arg2, %c0_i32 : i32, i32, i32
  }
  func.func @transform_2(%arg0: i32, %arg1: i32, %arg2: i32) -> (i32, i32, i32) {
    %c0_i32 = arith.constant 0 : i32
    %c0_i32_0 = arith.constant 0 : i32
    return %arg0, %arg2, %c0_i32 : i32, i32, i32
  }
  func.func @transform_3(%arg0: i32, %arg1: i32, %arg2: i32) -> (i32, i32, i32) {
    %c0_i32 = arith.constant 0 : i32
    %c0_i32_0 = arith.constant 0 : i32
    return %arg0, %arg1, %c0_i32 : i32, i32, i32
  }
}

module attributes {stable_mosaic.version = 11 : i64} {
  func.func @_linear_kernel(%arg0: i32, %arg1: i32, %arg2: i32, %arg3: memref<16x32xf32, #tpu.memory_space<vmem>>, %arg4: memref<32x32xf32, #tpu.memory_space<vmem>>, %arg5: memref<1x32xf32, #tpu.memory_space<vmem>>, %arg6: memref<16x32xf32, #tpu.memory_space<vmem>>, %arg7: memref<16x32xf32, #tpu.memory_space<vmem>>) attributes {dimension_semantics = [#tpu.dimension_semantics<parallel>, #tpu.dimension_semantics<parallel>, #tpu.dimension_semantics<arbitrary>], iteration_bounds = array<i64: 1, 1, 1>, scalar_prefetch = 0 : i64, scratch_operands = 1 : i64, tpu.core_type = #tpu.core_type<tc>, window_params = [{transform_indices = @transform_0, window_bounds = array<i64: 16, 32>}, {transform_indices = @transform_1, window_bounds = array<i64: 32, 32>}, {transform_indices = @transform_2, window_bounds = array<i64: 1, 32>}, {transform_indices = @transform_3, window_bounds = array<i64: 16, 32>}]} {
    %c0_i32 = arith.constant 0 : i32
    %0 = arith.cmpi eq, %arg2, %c0_i32 : i32
    %1 = arith.extui %0 : i1 to i32
    %c0_i32_0 = arith.constant 0 : i32
    %2 = arith.cmpi ne, %1, %c0_i32_0 : i32
    scf.if %2 {
      %cst_10 = arith.constant 0.000000e+00 : f32
      %12 = vector.broadcast %cst_10 : f32 to vector<16x32xf32>
      %c0_11 = arith.constant 0 : index
      %c0_12 = arith.constant 0 : index
      %13 = vector.load %arg7[%c0_11, %c0_12] : memref<16x32xf32, #tpu.memory_space<vmem>>, vector<16x32xf32>
      tpu.vector_store %arg7[%c0_11, %c0_12], %12 {strides = array<i32>} : memref<16x32xf32, #tpu.memory_space<vmem>>, vector<16x32xf32>,
    } else {
    }
    %c0 = arith.constant 0 : index
    %c0_1 = arith.constant 0 : index
    %3 = vector.load %arg7[%c0, %c0_1] : memref<16x32xf32, #tpu.memory_space<vmem>>, vector<16x32xf32>
    %c0_2 = arith.constant 0 : index
    %c0_3 = arith.constant 0 : index
    %4 = vector.load %arg3[%c0_2, %c0_3] : memref<16x32xf32, #tpu.memory_space<vmem>>, vector<16x32xf32>
    %c0_4 = arith.constant 0 : index
    %c0_5 = arith.constant 0 : index
    %5 = vector.load %arg4[%c0_4, %c0_5] : memref<32x32xf32, #tpu.memory_space<vmem>>, vector<32x32xf32>
    %cst = arith.constant dense<0.000000e+00> : vector<16x32xf32>
    %6 = tpu.matmul %4, %5, %cst {dimension_numbers = #tpu.dot_dimension_numbers<[1], [0], [0], [1], [0, 0, 1, 1], [], []>} : vector<16x32xf32>, vector<32x32xf32>, vector<16x32xf32> -> vector<16x32xf32>
    %7 = arith.addf %3, %6 : vector<16x32xf32>
    %c0_6 = arith.constant 0 : index
    %c0_7 = arith.constant 0 : index
    %8 = vector.load %arg7[%c0_6, %c0_7] : memref<16x32xf32, #tpu.memory_space<vmem>>, vector<16x32xf32>
    tpu.vector_store %arg7[%c0_6, %c0_7], %7 {strides = array<i32>} : memref<16x32xf32, #tpu.memory_space<vmem>>, vector<16x32xf32>,
    %c0_i32_8 = arith.constant 0 : i32
    %9 = arith.cmpi eq, %arg2, %c0_i32_8 : i32
    %10 = arith.extui %9 : i1 to i32
    %c0_i32_9 = arith.constant 0 : i32
    %11 = arith.cmpi ne, %10, %c0_i32_9 : i32
    scf.if %11 {
      %c0_10 = arith.constant 0 : index
      %c0_11 = arith.constant 0 : index
      %12 = vector.load %arg7[%c0_10, %c0_11] : memref<16x32xf32, #tpu.memory_space<vmem>>, vector<16x32xf32>
      %c0_12 = arith.constant 0 : index
      %c0_13 = arith.constant 0 : index
      %13 = vector.load %arg5[%c0_12, %c0_13] : memref<1x32xf32, #tpu.memory_space<vmem>>, vector<1x32xf32>
      %14 = vector.broadcast %13 : vector<1x32xf32> to vector<16x32xf32>
      %15 = arith.addf %12, %14 : vector<16x32xf32>
      %cst_14 = arith.constant 0.000000e+00 : f32
      %16 = vector.broadcast %cst_14 : f32 to vector<16x32xf32>
      %17 = arith.maximumf %15, %16 : vector<16x32xf32>
      %c0_15 = arith.constant 0 : index
      %c0_16 = arith.constant 0 : index
      %18 = vector.load %arg6[%c0_15, %c0_16] : memref<16x32xf32, #tpu.memory_space<vmem>>, vector<16x32xf32>
      tpu.vector_store %arg6[%c0_15, %c0_16], %17 {strides = array<i32>} : memref<16x32xf32, #tpu.memory_space<vmem>>, vector<16x32xf32>,
    } else {
    }
    return
  }
  func.func @transform_0(%arg0: i32, %arg1: i32, %arg2: i32) -> (i32, i32) {
    %c0_i32 = arith.constant 0 : i32
    return %arg0, %arg2 : i32, i32
  }
  func.func @transform_1(%arg0: i32, %arg1: i32, %arg2: i32) -> (i32, i32) {
    %c0_i32 = arith.constant 0 : i32
    return %arg2, %arg1 : i32, i32
  }
  func.func @transform_2(%arg0: i32, %arg1: i32, %arg2: i32) -> (i32, i32) {
    %c0_i32 = arith.constant 0 : i32
    %c0_i32_0 = arith.constant 0 : i32
    return %c0_i32, %arg1 : i32, i32
  }
  func.func @transform_3(%arg0: i32, %arg1: i32, %arg2: i32) -> (i32, i32) {
    %c0_i32 = arith.constant 0 : i32
    return %arg0, %arg1 : i32, i32
  }
}

module attributes {stable_mosaic.version = 11 : i64} {
  func.func @_linear_res_ln_kernel(%arg0: i32, %arg1: i32, %arg2: memref<16x32xf32, #tpu.memory_space<vmem>>, %arg3: memref<32x32xf32, #tpu.memory_space<vmem>>, %arg4: memref<1x32xf32, #tpu.memory_space<vmem>>, %arg5: memref<16x32xf32, #tpu.memory_space<vmem>>, %arg6: memref<1x32xf32, #tpu.memory_space<vmem>>, %arg7: memref<1x32xf32, #tpu.memory_space<vmem>>, %arg8: memref<16x32xf32, #tpu.memory_space<vmem>>, %arg9: memref<16x32xf32, #tpu.memory_space<vmem>>) attributes {dimension_semantics = [#tpu.dimension_semantics<parallel>, #tpu.dimension_semantics<arbitrary>], iteration_bounds = array<i64: 1, 1>, scalar_prefetch = 0 : i64, scratch_operands = 1 : i64, tpu.core_type = #tpu.core_type<tc>, window_params = [{transform_indices = @transform_0, window_bounds = array<i64: 16, 32>}, {transform_indices = @transform_1, window_bounds = array<i64: 32, 32>}, {pipeline_mode = #tpu.pipeline_mode<synchronous>, transform_indices = @transform_2, window_bounds = array<i64: 1, 32>}, {transform_indices = @transform_3, window_bounds = array<i64: 16, 32>}, {pipeline_mode = #tpu.pipeline_mode<synchronous>, transform_indices = @transform_4, window_bounds = array<i64: 1, 32>}, {pipeline_mode = #tpu.pipeline_mode<synchronous>, transform_indices = @transform_5, window_bounds = array<i64: 1, 32>}, {transform_indices = @transform_6, window_bounds = array<i64: 16, 32>}]} {
    %c0_i32 = arith.constant 0 : i32
    %0 = arith.cmpi eq, %arg1, %c0_i32 : i32
    %1 = arith.extui %0 : i1 to i32
    %c0_i32_0 = arith.constant 0 : i32
    %2 = arith.cmpi ne, %1, %c0_i32_0 : i32
    scf.if %2 {
      %cst_10 = arith.constant 0.000000e+00 : f32
      %12 = vector.broadcast %cst_10 : f32 to vector<16x32xf32>
      %c0_11 = arith.constant 0 : index
      %c0_12 = arith.constant 0 : index
      %13 = vector.load %arg9[%c0_11, %c0_12] : memref<16x32xf32, #tpu.memory_space<vmem>>, vector<16x32xf32>
      tpu.vector_store %arg9[%c0_11, %c0_12], %12 {strides = array<i32>} : memref<16x32xf32, #tpu.memory_space<vmem>>, vector<16x32xf32>,
    } else {
    }
    %c0 = arith.constant 0 : index
    %c0_1 = arith.constant 0 : index
    %3 = vector.load %arg9[%c0, %c0_1] : memref<16x32xf32, #tpu.memory_space<vmem>>, vector<16x32xf32>
    %c0_2 = arith.constant 0 : index
    %c0_3 = arith.constant 0 : index
    %4 = vector.load %arg2[%c0_2, %c0_3] : memref<16x32xf32, #tpu.memory_space<vmem>>, vector<16x32xf32>
    %c0_4 = arith.constant 0 : index
    %c0_5 = arith.constant 0 : index
    %5 = vector.load %arg3[%c0_4, %c0_5] : memref<32x32xf32, #tpu.memory_space<vmem>>, vector<32x32xf32>
    %cst = arith.constant dense<0.000000e+00> : vector<16x32xf32>
    %6 = tpu.matmul %4, %5, %cst {dimension_numbers = #tpu.dot_dimension_numbers<[1], [0], [0], [1], [0, 0, 1, 1], [], []>} : vector<16x32xf32>, vector<32x32xf32>, vector<16x32xf32> -> vector<16x32xf32>
    %7 = arith.addf %3, %6 : vector<16x32xf32>
    %c0_6 = arith.constant 0 : index
    %c0_7 = arith.constant 0 : index
    %8 = vector.load %arg9[%c0_6, %c0_7] : memref<16x32xf32, #tpu.memory_space<vmem>>, vector<16x32xf32>
    tpu.vector_store %arg9[%c0_6, %c0_7], %7 {strides = array<i32>} : memref<16x32xf32, #tpu.memory_space<vmem>>, vector<16x32xf32>,
    %c0_i32_8 = arith.constant 0 : i32
    %9 = arith.cmpi eq, %arg1, %c0_i32_8 : i32
    %10 = arith.extui %9 : i1 to i32
    %c0_i32_9 = arith.constant 0 : i32
    %11 = arith.cmpi ne, %10, %c0_i32_9 : i32
    scf.if %11 {
      %c0_10 = arith.constant 0 : index
      %c0_11 = arith.constant 0 : index
      %12 = vector.load %arg9[%c0_10, %c0_11] : memref<16x32xf32, #tpu.memory_space<vmem>>, vector<16x32xf32>
      %c0_12 = arith.constant 0 : index
      %c0_13 = arith.constant 0 : index
      %13 = vector.load %arg4[%c0_12, %c0_13] : memref<1x32xf32, #tpu.memory_space<vmem>>, vector<1x32xf32>
      %14 = vector.broadcast %13 : vector<1x32xf32> to vector<16x32xf32>
      %15 = arith.addf %12, %14 : vector<16x32xf32>
      %c0_14 = arith.constant 0 : index
      %c0_15 = arith.constant 0 : index
      %16 = vector.load %arg5[%c0_14, %c0_15] : memref<16x32xf32, #tpu.memory_space<vmem>>, vector<16x32xf32>
      %17 = arith.addf %15, %16 : vector<16x32xf32>
      %cst_16 = arith.constant dense<0.000000e+00> : vector<16xf32>
      %18 = vector.multi_reduction <add>, %17, %cst_16 [1] : vector<16x32xf32> to vector<16xf32>
      %19 = vector.shape_cast %18 : vector<16xf32> to vector<16x1xf32>
      %cst_17 = arith.constant 3.200000e+01 : f32
      %20 = vector.broadcast %cst_17 : f32 to vector<16x1xf32>
      %21 = arith.divf %19, %20 : vector<16x1xf32>
      %22 = vector.broadcast %21 : vector<16x1xf32> to vector<16x32xf32>
      %23 = arith.subf %17, %22 : vector<16x32xf32>
      %24 = arith.mulf %23, %23 : vector<16x32xf32>
      %cst_18 = arith.constant dense<0.000000e+00> : vector<16xf32>
      %25 = vector.multi_reduction <add>, %24, %cst_18 [1] : vector<16x32xf32> to vector<16xf32>
      %26 = vector.shape_cast %25 : vector<16xf32> to vector<16x1xf32>
      %cst_19 = arith.constant 3.200000e+01 : f32
      %27 = vector.broadcast %cst_19 : f32 to vector<16x1xf32>
      %28 = arith.divf %26, %27 : vector<16x1xf32>
      %29 = vector.broadcast %21 : vector<16x1xf32> to vector<16x32xf32>
      %30 = arith.subf %17, %29 : vector<16x32xf32>
      %cst_20 = arith.constant 9.99999974E-6 : f32
      %31 = vector.broadcast %cst_20 : f32 to vector<16x1xf32>
      %32 = arith.addf %28, %31 : vector<16x1xf32>
      %33 = math.rsqrt %32 : vector<16x1xf32>
      %34 = vector.broadcast %33 : vector<16x1xf32> to vector<16x32xf32>
      %35 = arith.mulf %30, %34 : vector<16x32xf32>
      %c0_21 = arith.constant 0 : index
      %c0_22 = arith.constant 0 : index
      %36 = vector.load %arg6[%c0_21, %c0_22] : memref<1x32xf32, #tpu.memory_space<vmem>>, vector<1x32xf32>
      %37 = vector.broadcast %36 : vector<1x32xf32> to vector<16x32xf32>
      %38 = arith.mulf %35, %37 : vector<16x32xf32>
      %c0_23 = arith.constant 0 : index
      %c0_24 = arith.constant 0 : index
      %39 = vector.load %arg7[%c0_23, %c0_24] : memref<1x32xf32, #tpu.memory_space<vmem>>, vector<1x32xf32>
      %40 = vector.broadcast %39 : vector<1x32xf32> to vector<16x32xf32>
      %41 = arith.addf %38, %40 : vector<16x32xf32>
      %c0_25 = arith.constant 0 : index
      %c0_26 = arith.constant 0 : index
      %42 = vector.load %arg8[%c0_25, %c0_26] : memref<16x32xf32, #tpu.memory_space<vmem>>, vector<16x32xf32>
      tpu.vector_store %arg8[%c0_25, %c0_26], %41 {strides = array<i32>} : memref<16x32xf32, #tpu.memory_space<vmem>>, vector<16x32xf32>,
    } else {
    }
    return
  }
  func.func @transform_0(%arg0: i32, %arg1: i32) -> (i32, i32) {
    %c0_i32 = arith.constant 0 : i32
    return %arg0, %arg1 : i32, i32
  }
  func.func @transform_1(%arg0: i32, %arg1: i32) -> (i32, i32) {
    %c0_i32 = arith.constant 0 : i32
    %c0_i32_0 = arith.constant 0 : i32
    return %arg1, %c0_i32 : i32, i32
  }
  func.func @transform_2(%arg0: i32, %arg1: i32) -> (i32, i32) {
    %c0_i32 = arith.constant 0 : i32
    %c0_i32_0 = arith.constant 0 : i32
    %c0_i32_1 = arith.constant 0 : i32
    return %c0_i32, %c0_i32_0 : i32, i32
  }
  func.func @transform_3(%arg0: i32, %arg1: i32) -> (i32, i32) {
    %c0_i32 = arith.constant 0 : i32
    %c0_i32_0 = arith.constant 0 : i32
    return %arg0, %c0_i32 : i32, i32
  }
  func.func @transform_4(%arg0: i32, %arg1: i32) -> (i32, i32) {
    %c0_i32 = arith.constant 0 : i32
    %c0_i32_0 = arith.constant 0 : i32
    %c0_i32_1 = arith.constant 0 : i32
    return %c0_i32, %c0_i32_0 : i32, i32
  }
  func.func @transform_5(%arg0: i32, %arg1: i32) -> (i32, i32) {
    %c0_i32 = arith.constant 0 : i32
    %c0_i32_0 = arith.constant 0 : i32
    %c0_i32_1 = arith.constant 0 : i32
    return %c0_i32, %c0_i32_0 : i32, i32
  }
  func.func @transform_6(%arg0: i32, %arg1: i32) -> (i32, i32) {
    %c0_i32 = arith.constant 0 : i32
    %c0_i32_0 = arith.constant 0 : i32
    return %arg0, %c0_i32 : i32, i32
  }
}

</mosaic_0001>

<bundles_post_ra>
// kernel: transformer_net_forward.12
= control target key start
LH: loop header
LB: loop body
LE: loop exit
PB: predicated region body
PF: predicated region fallthrough
CT: control target
= control target key end

     0   :  { %vm29_vm0 = vcmask 261120   ;;  %vm18_vm1 = vcmask 785408   ;;  %v157_v2 = vmov 0.0   ;;  %s213_s1 = inlined_call_operand.vmem [shape: f32[32,96], index: 1, kind: input, shape index: {}]   ;;  %s214_s0 = inlined_call_operand.vmem [shape: f32[16,32], index: 0, kind: input, shape index: {}]   ;;  %s215_s2 = inlined_call_operand.vmem [shape: f32[1,96], index: 2, kind: input, shape index: {}]   ;;  %s216_s3 = inlined_call_operand.vmem [shape: f32[16,96], index: 3, kind: output, shape index: {}]  }
   0x1   :  { %v28_v0 = vld [vmem:[%s213_s1 + $0x18] sm:$0xff]  ;;  %v27_v1 = vld [vmem:[%s213_s1 + $0x10] sm:$0xff]  ;;  %20 = vst.msk [vmem:[#allocation2 + $0x8] sm:$0xff] %vm18_vm1, %v157_v2  ;;  %19 = vst.msk [vmem:[#allocation2] sm:$0xff] %vm18_vm1, %v157_v2 }
   0x2   :  { %145 = vmatprep.subr.mxu0 %v28_v0  ;;  %v23_v3 = vld [vmem:[%s214_s0] sm:$0xff]  ;;  %v26_v4 = vld [vmem:[%s213_s1 + $0x8] sm:$0xff] }
   0x3   :  { %146 = vmatpush3.msra.mxu0 %v28_v0  ;;  %153 = vmatprep.mubr.msk.f32.mxu0 %vm29_vm0, %v23_v3  ;;  %v25_v5 = vld [vmem:[%s213_s1] sm:$0xff]  ;;  %v24_v6 = vld [vmem:[%s214_s0 + $0x8] sm:$0xff] }
   0x4   :  { %147 = vmatprep.subr.mxu0 %v27_v1  ;;  %v138_v13 = vld [vmem:[%s215_s2] ss:$0 sm:$0xff] }
   0x5   :  { %148 = vmatpush3.msra.mxu0 %v27_v1 }
   0x6   :  { %149 = vmatprep.subr.mxu0 %v26_v4 }
   0x7   :  { %150 = vmatpush3.msra.mxu0 %v26_v4 }
   0x8   :  { %151 = vmatprep.subr.mxu0 %v25_v5  ;;  %v22_v7 = vld [vmem:[#allocation2 + $0x8] sm:$0xff]  ;;  %v21_v9 = vld [vmem:[#allocation2] sm:$0xff] }
   0x9   :  { %152 = vmatpush3.msra.mxu0 %v25_v5 }
   0xa   :  { %154 = vmatmul.mubr.msk.f32.vlgmr.msra.gmra.mxu0 %vm29_vm0, %v24_v6 }
  0xca   :  { %v155_v8 = vpop.f32.mrf.mxu0 }
  0xcb   :  { %v112_v10 = vadd.f32 %v155_v8, %v22_v7 }
  0xcc   :  { %v102_v11 = vpop.f32.mrf.mxu0 }
  0xcd   :  { %115 = vst.msk [vmem:[#allocation2 + $0x8] sm:$0xff] %vm18_vm1, %v112_v10  ;;  %v111_v12 = vadd.f32 %v102_v11, %v21_v9 }
  0xcf   :  { %114 = vst.msk [vmem:[#allocation2] sm:$0xff] %vm18_vm1, %v111_v12 }
  0xd4   :  { %v120_v14 = vld [vmem:[#allocation2 + $0x8] sm:$0xff] }
  0xd5   :  { %v129_v15 = vadd.f32 %v138_v13, %v120_v14 }
  0xd6   :  { %v119_v16 = vld [vmem:[#allocation2] sm:$0xff] }
  0xd7   :  { %131 = vst.msk [vmem:[%s216_s3 + $0x8] sm:$0xff] %vm18_vm1, %v129_v15  ;;  %v128_v17 = vadd.f32 %v138_v13, %v119_v16 }
  0xd9   :  { %130 = vst.msk [vmem:[%s216_s3] sm:$0xff] %vm18_vm1, %v128_v17 }

// kernel: transformer_net_forward.14
= control target key start
LH: loop header
LB: loop body
LE: loop exit
PB: predicated region body
PF: predicated region fallthrough
CT: control target
= control target key end

     0   :  { %vm27_vm0 = vcmask 261120   ;;  %v220_v2 = vmov 0.0   ;;  %s307_s1 = inlined_call_operand.vmem [shape: f32[32,32], index: 1, kind: input, shape index: {}]   ;;  %s308_s0 = inlined_call_operand.vmem [shape: f32[16,32], index: 0, kind: input, shape index: {}]   ;;  %s309_s2 = inlined_call_operand.vmem [shape: f32[1,32], index: 2, kind: input, shape index: {}]   ;;  %s310_s3 = inlined_call_operand.vmem [shape: f32[16,32], index: 3, kind: input, shape index: {}]   ;;  %s311_s4 = inlined_call_operand.vmem [shape: f32[1,32], index: 4, kind: input, shape index: {}]   ;;  %s312_s5 = inlined_call_operand.vmem [shape: f32[1,32], index: 5, kind: input, shape index: {}]   ;;  %s313_s6 = inlined_call_operand.vmem [shape: f32[16,32], index: 6, kind: output, shape index: {}]  }
   0x1   :  { %v37_v0 = vld [vmem:[%s307_s1 + $0x18] sm:$0xff]  ;;  %v36_v1 = vld [vmem:[%s307_s1 + $0x10] sm:$0xff]  ;;  %29 = vst.msk [vmem:[#allocation2 + $0x8] sm:$0xff] %vm27_vm0, %v220_v2  ;;  %28 = vst.msk [vmem:[#allocation2] sm:$0xff] %vm27_vm0, %v220_v2 }
   0x2   :  { %204 = vmatprep.subr.mxu0 %v37_v0  ;;  %v32_v3 = vld [vmem:[%s308_s0] sm:$0xff]  ;;  %v35_v4 = vld [vmem:[%s307_s1 + $0x8] sm:$0xff] }
   0x3   :  { %205 = vmatpush3.msra.mxu0 %v37_v0  ;;  %212 = vmatprep.mubr.msk.f32.mxu0 %vm27_vm0, %v32_v3  ;;  %v34_v5 = vld [vmem:[%s307_s1] sm:$0xff]  ;;  %v33_v6 = vld [vmem:[%s308_s0 + $0x8] sm:$0xff] }
   0x4   :  { %206 = vmatprep.subr.mxu0 %v36_v1  ;;  %v195_v13 = vld [vmem:[%s309_s2] ss:$0 sm:$0xff]  ;;  %v139_v19 = vld [vmem:[%s310_s3 + $0x8] sm:$0xff] }
   0x5   :  { %207 = vmatpush3.msra.mxu0 %v36_v1  ;;  %v138_v16 = vld [vmem:[%s310_s3] sm:$0xff] }
   0x6   :  { %208 = vmatprep.subr.mxu0 %v35_v4  ;;  %v196_v41 = vld [vmem:[%s311_s4] ss:$0 sm:$0xff] }
   0x7   :  { %209 = vmatpush3.msra.mxu0 %v35_v4  ;;  %v197_v43 = vld [vmem:[%s312_s5] ss:$0 sm:$0xff] }
   0x8   :  { %210 = vmatprep.subr.mxu0 %v34_v5  ;;  %v31_v7 = vld [vmem:[#allocation2 + $0x8] sm:$0xff]  ;;  %v30_v9 = vld [vmem:[#allocation2] sm:$0xff] }
   0x9   :  { %211 = vmatpush3.msra.mxu0 %v34_v5 }
   0xa   :  { %213 = vmatmul.mubr.msk.f32.vlgmr.msra.gmra.mxu0 %vm27_vm0, %v33_v6 }
  0xca   :  { %v214_v8 = vpop.f32.mrf.mxu0 }
  0xcb   :  { %v121_v10 = vadd.f32 %v214_v8, %v31_v7 }
  0xcc   :  { %v111_v11 = vpop.f32.mrf.mxu0 }
  0xcd   :  { %123 = vst.msk [vmem:[#allocation2 + $0x8] sm:$0xff] %vm27_vm0, %v121_v10  ;;  %v120_v12 = vadd.f32 %v111_v11, %v30_v9 }
  0xcf   :  { %122 = vst.msk [vmem:[#allocation2] sm:$0xff] %vm27_vm0, %v120_v12 }
  0xd4   :  { %v128_v14 = vld [vmem:[#allocation2 + $0x8] sm:$0xff] }
  0xd5   :  { %v137_v18 = vadd.f32 %v195_v13, %v128_v14 }
  0xd6   :  { %v127_v15 = vld [vmem:[#allocation2] sm:$0xff] }
  0xd7   :  { %v136_v17 = vadd.f32 %v195_v13, %v127_v15  ;;  %v141_v22 = vadd.f32 %v139_v19, %v137_v18 }
  0xd9   :  { %v140_v20 = vadd.f32 %v138_v16, %v136_v17  ;;  %v145_v23 = vsel %vm27_vm0, %v141_v22, 0.0 }
  0xdb   :  { %v142_v21 = vsel %vm27_vm0, %v140_v20, 0.0 }
  0xdc   :  { %143 = vadd.xlane.f32.xlu0 %v142_v21 }
  0xe0   :  { %146 = vadd.xlane.f32.xlu0 %v145_v23 }
 0x165   :  { %v144_v24 = vpop.xlane.xlu0 %143 }
 0x166   :  { %v149_v25 = vmul.f32 0.03125, %v144_v24 }
 0x168   :  { %v151_v26 = vsub.f32 %v140_v20, %v149_v25 }
 0x169   :  { %v147_v27 = vpop.xlane.xlu0 %146 }
 0x16a   :  { %v150_v28 = vmul.f32 0.03125, %v147_v27  ;;  %v153_v29 = vmul.f32 %v151_v26, %v151_v26 }
 0x16c   :  { %v152_v30 = vsub.f32 %v141_v22, %v150_v28  ;;  %v155_v31 = vsel %vm27_vm0, %v153_v29, 0.0 }
 0x16d   :  { %156 = vadd.xlane.f32.xlu1 %v155_v31 }
 0x16e   :  { %v154_v32 = vmul.f32 %v152_v30, %v152_v30 }
 0x170   :  { %v158_v33 = vsel %vm27_vm0, %v154_v32, 0.0 }
 0x171   :  { %159 = vadd.xlane.f32.xlu1 %v158_v33 }
 0x1f6   :  { %v157_v34 = vpop.xlane.xlu1 %156 }
 0x1f7   :  { %v161_v35 = vmul.f32 0.03125, %v157_v34 }
 0x1f9   :  { %v163_v36 = vadd.f32 1e-05, %v161_v35 }
 0x1fa   :  { %v160_v37 = vpop.xlane.xlu1 %159 }
 0x1fb   :  { %216 = vrsqrt.f32 %v163_v36  ;;  %v162_v38 = vmul.f32 0.03125, %v160_v37 }
 0x1fd   :  { %v164_v39 = vadd.f32 1e-05, %v162_v38 }
 0x1ff   :  { %218 = vrsqrt.f32 %v164_v39 }
 0x208   :  { %v217_v40 = vpop.eup %216 }
 0x209   :  { %v167_v42 = vmul.f32 %v217_v40, %v151_v26 }
 0x20b   :  { %v176_v44 = vmul.f32 %v196_v41, %v167_v42 }
 0x20c   :  { %v219_v45 = vpop.eup %218 }
 0x20d   :  { %v185_v46 = vadd.f32 %v197_v43, %v176_v44  ;;  %v168_v47 = vmul.f32 %v219_v45, %v152_v30 }
 0x20f   :  { %187 = vst.msk [vmem:[%s313_s6] sm:$0xff] %vm27_vm0, %v185_v46  ;;  %v177_v48 = vmul.f32 %v196_v41, %v168_v47 }
 0x211   :  { %v186_v49 = vadd.f32 %v197_v43, %v177_v48 }
 0x213   :  { %188 = vst.msk [vmem:[%s313_s6 + $0x8] sm:$0xff] %vm27_vm0, %v186_v49 }

// kernel: transformer_net_forward.11
= control target key start
LH: loop header
LB: loop body
LE: loop exit
PB: predicated region body
PF: predicated region fallthrough
CT: control target
= control target key end

     0   :  { %vm27_vm0 = vcmask 130048   ;;  %vm18_vm1 = vcmask 261120   ;;  %v149_v3 = vmov 0.0   ;;  %s197_s1 = inlined_call_operand.vmem [shape: f32[16,32], index: 1, kind: input, shape index: {}]   ;;  %s198_s0 = inlined_call_operand.vmem [shape: f32[16,16], index: 0, kind: input, shape index: {}]   ;;  %s199_s2 = inlined_call_operand.vmem [shape: f32[1,32], index: 2, kind: input, shape index: {}]   ;;  %s200_s3 = inlined_call_operand.vmem [shape: f32[16,32], index: 3, kind: output, shape index: {}]  }
   0x1   :  { %v26_v0 = vld [vmem:[%s197_s1 + $0x8] sm:$0xff]  ;;  %v25_v1 = vld [vmem:[%s197_s1] sm:$0xff]  ;;  %20 = vst.msk [vmem:[#allocation2 + $0x8] sm:$0xff] %vm18_vm1, %v149_v3  ;;  %19 = vst.msk [vmem:[#allocation2] sm:$0xff] %vm18_vm1, %v149_v3 }
   0x2   :  { %v23_v2 = vld [vmem:[%s198_s0] sm:$0xff]  ;;  %141 = vmatprep.subr.mxu0 %v26_v0  ;;  %v24_v4 = vld [vmem:[%s198_s0 + $0x8] sm:$0xff] }
   0x3   :  { %145 = vmatprep.mubr.msk.f32.mxu0 %vm27_vm0, %v23_v2  ;;  %142 = vmatpush3.msra.mxu0 %v26_v0  ;;  %v136_v11 = vld [vmem:[%s199_s2] ss:$0 sm:$0xff] }
   0x4   :  { %143 = vmatprep.subr.mxu0 %v25_v1 }
   0x5   :  { %144 = vmatpush3.msra.mxu0 %v25_v1 }
   0x6   :  { %146 = vmatmul.mubr.msk.f32.vlgmr.msra.gmra.mxu0 %vm27_vm0, %v24_v4 }
   0x8   :  { %v22_v5 = vld [vmem:[#allocation2 + $0x8] sm:$0xff]  ;;  %v21_v7 = vld [vmem:[#allocation2] sm:$0xff] }
  0xc6   :  { %v147_v6 = vpop.f32.mrf.mxu0 }
  0xc7   :  { %v110_v8 = vadd.f32 %v147_v6, %v22_v5 }
  0xc8   :  { %v100_v9 = vpop.f32.mrf.mxu0 }
  0xc9   :  { %113 = vst.msk [vmem:[#allocation2 + $0x8] sm:$0xff] %vm18_vm1, %v110_v8  ;;  %v109_v10 = vadd.f32 %v100_v9, %v21_v7 }
  0xcb   :  { %112 = vst.msk [vmem:[#allocation2] sm:$0xff] %vm18_vm1, %v109_v10 }
  0xd0   :  { %v118_v12 = vld [vmem:[#allocation2 + $0x8] sm:$0xff] }
  0xd1   :  { %v127_v13 = vadd.f32 %v136_v11, %v118_v12 }
  0xd2   :  { %v117_v14 = vld [vmem:[#allocation2] sm:$0xff] }
  0xd3   :  { %129 = vst.msk [vmem:[%s200_s3 + $0x8] sm:$0xff] %vm18_vm1, %v127_v13  ;;  %v126_v15 = vadd.f32 %v136_v11, %v117_v14 }
  0xd5   :  { %128 = vst.msk [vmem:[%s200_s3] sm:$0xff] %vm18_vm1, %v126_v15 }

// kernel: transformer_net_forward.13
= control target key start
LH: loop header
LB: loop body
LE: loop exit
PB: predicated region body
PF: predicated region fallthrough
CT: control target
= control target key end

     0   :  { %s1415_s12 = smov 0   ;;  %s1417_s13 = smov 0   ;;  %s1567_s0 = inlined_call_operand.vmem [shape: f32[2,8,32], index: 0, kind: input, shape index: {}]   ;;  %s1568_s1 = inlined_call_operand.vmem [shape: f32[2,8,32], index: 1, kind: input, shape index: {}]   ;;  %s1569_s2 = inlined_call_operand.vmem [shape: f32[2,8,32], index: 2, kind: input, shape index: {}]   ;;  %s1570_s3 = inlined_call_operand.vmem [shape: f32[2,8,32], index: 3, kind: output, shape index: {}]  }
   0x1   :  { %s1419_s14 = smov 0  }
   0x2 LB: > { %s32_s15 = sadd.s32 1, %s1379_s13  ;;  %p1226_p0 = scmp.ge.s32.totalorder %s1383_s14, 1  ;;  %s1383_s14 = sphi %s1419_s14, %s13_s14   ;;  %s1379_s13 = sphi %s1417_s13, %s1572_s13   ;;  %s1375_s12 = sphi %s1415_s12, %s1571_s12  }
   0x3   : > { %p34_p1 = scmp.ge.s32.totalorder %s32_s15, 2  ;;  %p190_p2 = scmp.lt.s32.totalorder %s1383_s14, 3 }
   0x5   : > { %s1574_s15 = smov (%p34_p1, %s32_s15), 0  ;;  %p191_p3 = pnand %p1226_p0, %p190_p2 }
   0x6   : > { %p232_p4 = scmp.lt.s32.totalorder (!%p191_p3), %s1375_s12, 1  ;;  %s1389_s23 = smov (!%p191_p3), 120  }
   0x7   : > { %194 = sbr.rel (%p191_p3) target bundleno = 1392 (0x570), region = 32  ;;  %s1390_s24 = smov (!%p191_p3), 112  }
   0x8   : > { %s1391_s25 = smov (!%p191_p3), 104   ;;  %s1392_s5 = smov (!%p191_p3), 8  }
   0x9   : > { %s1393_s6 = smov (!%p191_p3), 16   ;;  %s1394_s7 = smov (!%p191_p3), 24  }
   0xc   : > { %vm273_vm0 = vcmask 64512   ;;  %v1385_v0 = vmov 0.0   ;;  %vm1386_vm1 = vmmov 0   ;;  %s1576_s12 = smov (!%p232_p4, %s1375_s12), 1  ;;  %vm264_vm2 = vcmask 7168  }
   0xd   : > { %1261 = vmatprep.subr.mxu0 %v1385_v0  ;;  %274 = vst.msk [vmem:[#allocation4] sm:$0xff] %vm273_vm0, %v1385_v0  ;;  %275 = vst.msk [vmem:[#allocation4 + $0x8] sm:$0xff] %vm273_vm0, %v1385_v0  ;;  %1263 = vmatprep.mubr.msk.f32.mxu0 %vm1386_vm1, %v1385_v0  ;;  %s1447_s16 = sshll.u32 %s1576_s12, 3  ;;  %v1387_v3 = vmov -inf   ;;  %v1388_v8 = vmov 0   ;;  %vm1083_vm3 = vcmask 130112  }
   0xe   : > { %276 = vst.msk [vmem:[#allocation4 + $0x10] sm:$0xff] %vm273_vm0, %v1385_v0  ;;  %277 = vst.msk [vmem:[#allocation4 + $0x18] sm:$0xff] %vm273_vm0, %v1385_v0  ;;  %1266 = vmatprep.subr.mxu1 %v1385_v0  ;;  %1268 = vmatprep.mubr.msk.f32.mxu1 %vm1386_vm1, %v1385_v0  ;;  %s245_s19 = scalar_lea.vmem %s1568_s1, %s1447_s16  ;;  %s238_s22 = scalar_lea.vmem %s1567_s0, %s1447_s16  ;;  %vm1098_vm4 = vcmask 195712   ;;  %vm1113_vm5 = vcmask 261312  }
   0xf   : > { %v279_v1 = vld [vmem:[%s245_s19] sm:$0xff]  ;;  %265 = vst.msk [vmem:[#allocation2] sm:$0xff] %vm264_vm2, %v1387_v3  ;;  %266 = vst.msk [vmem:[#allocation2 + $0x8] sm:$0xff] %vm264_vm2, %v1387_v3  ;;  %1335 = vset.pattern.permute.xlu0 %v1388_v8  ;;  %1336 = vset.pattern.permute.xlu1 %v1388_v8  ;;  %s252_s28 = scalar_lea.vmem %s1569_s2, %s1447_s16  ;;  %s1550_s4 = scalar_lea.vmem %s1570_s3, %s1447_s16 }
  0x10   : > { %1262 = vmatpush3.xpose.msk.msra.mxu0 %vm273_vm0, %v279_v1  ;;  %v278_v2 = vld [vmem:[%s238_s22] sm:$0xff]  ;;  %267 = vst.msk [vmem:[#allocation2 + $0x10] sm:$0xff] %vm264_vm2, %v1387_v3  ;;  %268 = vst.msk [vmem:[#allocation2 + $0x18] sm:$0xff] %vm264_vm2, %v1387_v3  ;;  %473 = vrot.lane.b32.xlu1 %v279_v1, %s1389_s23 }
  0x11   : > { %1276 = vmatprep.subr.mxu0 %v1385_v0  ;;  %269 = vst.msk [vmem:[#allocation3] sm:$0xff] %vm264_vm2, %v1385_v0  ;;  %270 = vst.msk [vmem:[#allocation3 + $0x8] sm:$0xff] %vm264_vm2, %v1385_v0  ;;  %v280_v13 = vld [vmem:[%s252_s28] sm:$0xff] }
  0x12   : > { %271 = vst.msk [vmem:[#allocation3 + $0x10] sm:$0xff] %vm264_vm2, %v1385_v0  ;;  %272 = vst.msk [vmem:[#allocation3 + $0x18] sm:$0xff] %vm264_vm2, %v1385_v0  ;;  %1267 = vmatpush3.msra.mxu1 %v280_v13 }
  0x13   : > { %1264 = vmatmul.mubr.msk.f32.vlgmr.msra.gmra.mxu0 %vm273_vm0, %v278_v2  ;;  %1271 = vmatprep.subr.mxu1 %v1385_v0 }
  0x14   : > { %1278 = vmatprep.mubr.msk.f32.mxu0 %vm1386_vm1, %v1385_v0  ;;  %470 = vrot.lane.b32.xlu1 %v278_v2, %s1389_s23 }
  0x16   : > { %v1481_v9 = vld [vmem:[#allocation2] sm:$0xff]  ;;  %v551_v38 = vld [vmem:[#allocation2 + $0x8] sm:$0xff] }
  0x17   : > { %v748_v41 = vld [vmem:[#allocation2 + $0x10] sm:$0xff]  ;;  %v945_v45 = vld [vmem:[#allocation2 + $0x18] sm:$0xff] }
  0x18   : > { %670 = vrot.lane.b32.xlu1 %v279_v1, %s1390_s24 }
  0x1c   : > { %667 = vrot.lane.b32.xlu1 %v278_v2, %s1390_s24 }
  0x20   : > { %867 = vrot.lane.b32.xlu1 %v279_v1, %s1391_s25 }
  0x24   : > { %864 = vrot.lane.b32.xlu1 %v278_v2, %s1391_s25 }
  0x82   : > { %v474_v14 = vpop.permute.xlu1 %473 }
  0x86   : > { %v471_v18 = vpop.permute.xlu1 %470 }
  0x8a   : > { %v671_v19 = vpop.permute.xlu1 %670 }
  0x8e   : > { %v668_v20 = vpop.permute.xlu1 %667 }
  0x92   : > { %v868_v22 = vpop.permute.xlu1 %867 }
  0x96   : > { %v865_v23 = vpop.permute.xlu1 %864 }
  0xd3   : > { %v354_v4 = vpop.f32.mrf.mxu0 }
  0xd4   : > { %v358_v5 = vmul.f32 0.35355338, %v354_v4 }
  0xd5   : > { %v1265_v6 = vpop.f32.mrf.mxu0 }
  0xd6   : > { %v362_v7 = vsel %vm273_vm0, %v358_v5, -inf }
  0xd7   : > { %363 = vmax.xlane.f32.xlu0 %v362_v7 }
 0x160   : > { %v364_v10 = vpop.xlane.xlu0 %363 }
 0x161   : > { %v1484_v11 = vmax.f32 %v1481_v9, %v364_v10 }
 0x163   : > { %v366_v12 = vsub.f32 %v1481_v9, %v1484_v11  ;;  %463 = vst.msk [vmem:[#allocation2] sm:$0xff] %vm264_vm2, %v1484_v11  ;;  %371 = vperm.xlu0 %1335, %v1484_v11   ;;  %v553_v11 = vld [vmem:[#allocation3 + $0x8] sm:$0xff] }
 0x165   : > { %v367_v8 = vmul.f32 1.442695, %v366_v12 }
 0x1de   : > { %v372_v15 = vpop.permute.xlu0 %371 }
 0x1df   : > { %v374_v16 = vsub.f32 %v358_v5, %v372_v15 }
 0x1e1   : > { %v375_v17 = vmul.f32 1.442695, %v374_v16  ;;  %v360_v16 = vld [vmem:[#allocation3] sm:$0xff] }
 0x1e3   : > { %1337 = vpow2.f32 %v375_v17 }
 0x1f0   : > { %v1338_v21 = vpop.eup %1337 }
 0x1f1   : > { %1269 = vmatmul.mubr.msk.f32.vlgmr.msra.gmra.mxu1 %vm273_vm0, %v1338_v21  ;;  %v378_v50 = vsel %vm273_vm0, %v1338_v21, 0.0 }
 0x1f2   : > { %1272 = vmatpush3.xpose.msk.msra.mxu1 %vm273_vm0, %v474_v14  ;;  %1273 = vmatprep.mubr.msk.f32.mxu1 %vm1386_vm1, %v1385_v0 }
 0x1f3   : > { %1281 = vmatprep.subr.mxu1 %v1385_v0 }
 0x1f5   : > { %1274 = vmatmul.mubr.msk.f32.vlgmr.msra.gmra.mxu1 %vm273_vm0, %v471_v18 }
 0x1f6   : > { %1282 = vmatpush3.xpose.msk.msra.mxu1 %vm273_vm0, %v671_v19  ;;  %1283 = vmatprep.mubr.msk.f32.mxu1 %vm1386_vm1, %v1385_v0 }
 0x1f7   : > { %1291 = vmatprep.subr.mxu1 %v1385_v0 }
 0x1f9   : > { %1284 = vmatmul.mubr.msk.f32.vlgmr.msra.gmra.mxu1 %vm273_vm0, %v668_v20 }
 0x1fa   : > { %1292 = vmatpush3.xpose.msk.msra.mxu1 %vm273_vm0, %v868_v22  ;;  %1293 = vmatprep.mubr.msk.f32.mxu1 %vm1386_vm1, %v1385_v0  ;;  %v750_v22 = vld [vmem:[#allocation3 + $0x10] sm:$0xff] }
 0x1fd   : > { %1294 = vmatmul.mubr.msk.f32.vlgmr.msra.gmra.mxu1 %vm273_vm0, %v865_v23 }
 0x2b1   : > { %v1511_v24 = vpop.f32.mrf.mxu1 }
 0x2b3   : > { %v1270_v25 = vpop.f32.mrf.mxu1 }
 0x2b5   : > { %v545_v26 = vpop.f32.mrf.mxu1 }
 0x2b6   : > { %v549_v27 = vmul.f32 0.35355338, %v545_v26 }
 0x2b7   : > { %v1275_v28 = vpop.f32.mrf.mxu1 }
 0x2b8   : > { %v556_v29 = vsel %vm273_vm0, %v549_v27, -inf }
 0x2b9   : > { %557 = vmax.xlane.f32.xlu1 %v556_v29  ;;  %v742_v30 = vpop.f32.mrf.mxu1 }
 0x2ba   : > { %v746_v31 = vmul.f32 0.35355338, %v742_v30 }
 0x2bb   : > { %v1285_v32 = vpop.f32.mrf.mxu1 }
 0x2bc   : > { %v753_v33 = vsel %vm273_vm0, %v746_v31, -inf }
 0x2bd   : > { %754 = vmax.xlane.f32.xlu0 %v753_v33  ;;  %v939_v34 = vpop.f32.mrf.mxu1  ;;  %v361_v33 = vld [vmem:[#allocation4] sm:$0xff] }
 0x2be   : > { %v943_v35 = vmul.f32 0.35355338, %v939_v34 }
 0x2bf   : > { %v1295_v36 = vpop.f32.mrf.mxu1 }
 0x2c0   : > { %v950_v37 = vsel %vm273_vm0, %v943_v35, -inf }
 0x2c1   : > { %951 = vmax.xlane.f32.xlu1 %v950_v37 }
 0x342   : > { %v558_v39 = vpop.xlane.xlu1 %557 }
 0x343   : > { %v559_v40 = vmax.f32 %v551_v38, %v558_v39 }
 0x345   : > { %v560_v42 = vsub.f32 %v551_v38, %v559_v40  ;;  %660 = vst.msk [vmem:[#allocation2 + $0x8] sm:$0xff] %vm264_vm2, %v559_v40  ;;  %565 = vperm.xlu1 %1336, %v559_v40  }
 0x346   : > { %v755_v43 = vpop.xlane.xlu0 %754 }
 0x347   : > { %v756_v44 = vmax.f32 %v748_v41, %v755_v43  ;;  %v561_v3 = vmul.f32 1.442695, %v560_v42  ;;  %v555_v42 = vld [vmem:[#allocation4 + $0x8] sm:$0xff] }
 0x349   : > { %v757_v46 = vsub.f32 %v748_v41, %v756_v44  ;;  %857 = vst.msk [vmem:[#allocation2 + $0x10] sm:$0xff] %vm264_vm2, %v756_v44  ;;  %762 = vperm.xlu0 %1335, %v756_v44  }
 0x34a   : > { %v952_v47 = vpop.xlane.xlu1 %951 }
 0x34b   : > { %v953_v48 = vmax.f32 %v945_v45, %v952_v47  ;;  %v758_v10 = vmul.f32 1.442695, %v757_v46 }
 0x34d   : > { %v954_v49 = vsub.f32 %v945_v45, %v953_v48  ;;  %1054 = vst.msk [vmem:[#allocation2 + $0x18] sm:$0xff] %vm264_vm2, %v953_v48  ;;  %959 = vperm.xlu1 %1336, %v953_v48   ;;  %v752_v45 = vld [vmem:[#allocation4 + $0x10] sm:$0xff] }
 0x34f   : > { %v955_v6 = vmul.f32 1.442695, %v954_v49 }
 0x351   : > { %583 = vrot.lane.b32.xlu1 %v280_v13, %s1389_s23 }
 0x355   : > { %780 = vrot.lane.b32.xlu1 %v280_v13, %s1390_s24 }
 0x359   : > { %977 = vrot.lane.b32.xlu1 %v280_v13, %s1391_s25 }
 0x37d   : > { %379 = vadd.xlane.f32.xlu1 %v378_v50 }
 0x3c0   : > { %v566_v51 = vpop.permute.xlu1 %565 }
 0x3c1   : > { %v568_v52 = vsub.f32 %v549_v27, %v566_v51  ;;  %v947_v27 = vld [vmem:[#allocation3 + $0x18] sm:$0xff] }
 0x3c2   : > { %v949_v51 = vld [vmem:[#allocation4 + $0x18] sm:$0xff] }
 0x3c3   : > { %v569_v53 = vmul.f32 1.442695, %v568_v52 }
 0x3c4   : > { %v763_v54 = vpop.permute.xlu0 %762 }
 0x3c5   : > { %1339 = vpow2.f32 %v569_v53  ;;  %v765_v55 = vsub.f32 %v746_v31, %v763_v54 }
 0x3c7   : > { %v766_v56 = vmul.f32 1.442695, %v765_v55 }
 0x3c8   : > { %v960_v57 = vpop.permute.xlu1 %959 }
 0x3c9   : > { %1341 = vpow2.f32 %v766_v56  ;;  %v962_v58 = vsub.f32 %v943_v35, %v960_v57 }
 0x3cb   : > { %v963_v59 = vmul.f32 1.442695, %v962_v58 }
 0x3cc   : > { %v584_v60 = vpop.permute.xlu1 %583 }
 0x3cd   : > { %1343 = vpow2.f32 %v963_v59  ;;  %1277 = vmatpush3.msra.mxu0 %v584_v60 }
 0x3ce   : > { %1286 = vmatprep.subr.mxu0 %v1385_v0  ;;  %1345 = vpow2.f32 %v561_v3 }
 0x3cf   : > { %1347 = vpow2.f32 %v955_v6 }
 0x3d0   : > { %v781_v61 = vpop.permute.xlu1 %780  ;;  %1349 = vpow2.f32 %v367_v8 }
 0x3d1   : > { %1351 = vpow2.f32 %v758_v10 }
 0x3d2   : > { %v1340_v62 = vpop.eup %1339 }
 0x3d3   : > { %1279 = vmatmul.mubr.msk.f32.vlgmr.msra.gmra.mxu0 %vm273_vm0, %v1340_v62  ;;  %v572_v63 = vsel %vm273_vm0, %v1340_v62, 0.0 }
 0x3d4   : > { %573 = vadd.xlane.f32.xlu0 %v572_v63  ;;  %1287 = vmatpush3.msra.mxu0 %v781_v61  ;;  %v978_v1 = vpop.permute.xlu1 %977 }
 0x3d5   : > { %1288 = vmatprep.mubr.msk.f32.mxu0 %vm1386_vm1, %v1385_v0  ;;  %1296 = vmatprep.subr.mxu0 %v1385_v0 }
 0x3d6   : > { %v1342_v2 = vpop.eup %1341 }
 0x3d7   : > { %1289 = vmatmul.mubr.msk.f32.vlgmr.msra.gmra.mxu0 %vm273_vm0, %v1342_v2  ;;  %v769_v4 = vsel %vm273_vm0, %v1342_v2, 0.0 }
 0x3d8   : > { %770 = vadd.xlane.f32.xlu1 %v769_v4  ;;  %1297 = vmatpush3.msra.mxu0 %v978_v1 }
 0x3d9   : > { %1298 = vmatprep.mubr.msk.f32.mxu0 %vm1386_vm1, %v1385_v0 }
 0x3da   : > { %v1344_v5 = vpop.eup %1343 }
 0x3db   : > { %1299 = vmatmul.mubr.msk.f32.vlgmr.msra.gmra.mxu0 %vm273_vm0, %v1344_v5  ;;  %v966_v7 = vsel %vm273_vm0, %v1344_v5, 0.0  ;;  %v1346_v13 = vpop.eup %1345 }
 0x3dc   : > { %967 = vadd.xlane.f32.xlu0 %v966_v7  ;;  %v1348_v14 = vpop.eup %1347  ;;  %v571_v12 = vmul.f32 %v1346_v13, %v553_v11 }
 0x3dd   : > { %v1350_v0 = vpop.eup %1349  ;;  %v965_v29 = vmul.f32 %v1348_v14, %v947_v27 }
 0x3de   : > { %v1352_v15 = vpop.eup %1351  ;;  %v377_v17 = vmul.f32 %v1350_v0, %v360_v16 }
 0x3df   : > { %v768_v25 = vmul.f32 %v1352_v15, %v750_v22 }
 0x3e9   : > { %578 = vperm.xlu1 %1336, %v1346_v13  }
 0x3ed   : > { %972 = vperm.xlu1 %1336, %v1348_v14  }
 0x3f2   : > { %384 = vperm.xlu0 %1335, %v1350_v0  }
 0x3f6   : > { %775 = vperm.xlu0 %1335, %v1352_v15  }
 0x406   : > { %v380_v18 = vpop.xlane.xlu1 %379 }
 0x407   : > { %v381_v19 = vadd.f32 %v380_v18, %v377_v17 }
 0x409   : > { %464 = vst.msk [vmem:[#allocation3] sm:$0xff] %vm264_vm2, %v381_v19 }
 0x410   : > { %v1060_v20 = vld [vmem:[#allocation3] sm:$0xff] }
 0x411   : > { %1353 = vrcp.f32 %v1060_v20 }
 0x41e   : > { %v1354_v9 = vpop.eup %1353 }
 0x41f   : > { %1065 = vperm.xlu1 %1336, %v1354_v9  }
 0x45d   : > { %v574_v21 = vpop.xlane.xlu0 %573 }
 0x45e   : > { %v575_v23 = vadd.f32 %v574_v21, %v571_v12 }
 0x460   : > { %661 = vst.msk [vmem:[#allocation3 + $0x8] sm:$0xff] %vm264_vm2, %v575_v23 }
 0x461   : > { %v771_v26 = vpop.xlane.xlu1 %770 }
 0x462   : > { %v772_v28 = vadd.f32 %v771_v26, %v768_v25 }
 0x464   : > { %858 = vst.msk [vmem:[#allocation3 + $0x10] sm:$0xff] %vm264_vm2, %v772_v28 }
 0x465   : > { %v968_v30 = vpop.xlane.xlu0 %967  ;;  %v579_v43 = vpop.permute.xlu1 %578 }
 0x466   : > { %v969_v31 = vadd.f32 %v968_v30, %v965_v29  ;;  %v581_v44 = vmul.f32 %v579_v43, %v555_v42 }
 0x467   : > { %v1070_v32 = vld [vmem:[#allocation3 + $0x8] sm:$0xff] }
 0x468   : > { %1055 = vst.msk [vmem:[#allocation3 + $0x18] sm:$0xff] %vm264_vm2, %v969_v31  ;;  %1355 = vrcp.f32 %v1070_v32 }
 0x469   : > { %v973_v50 = vpop.permute.xlu1 %972 }
 0x46a   : > { %v975_v55 = vmul.f32 %v973_v50, %v949_v51 }
 0x46b   : > { %v1085_v34 = vld [vmem:[#allocation3 + $0x10] sm:$0xff] }
 0x46c   : > { %1357 = vrcp.f32 %v1085_v34 }
 0x46d   : > { %v385_v35 = vpop.permute.xlu0 %384 }
 0x46e   : > { %v387_v36 = vmul.f32 %v385_v35, %v361_v33 }
 0x46f   : > { %v1100_v37 = vld [vmem:[#allocation3 + $0x18] sm:$0xff] }
 0x470   : > { %v461_v38 = vadd.f32 %v1511_v24, %v387_v36  ;;  %1359 = vrcp.f32 %v1100_v37 }
 0x471   : > { %v776_v46 = vpop.permute.xlu0 %775 }
 0x472   : > { %465 = vst.msk [vmem:[#allocation4] sm:$0xff] %vm273_vm0, %v461_v38  ;;  %v778_v24 = vmul.f32 %v776_v46, %v752_v45 }
 0x475   : > { %v1356_v39 = vpop.eup %1355 }
 0x476   : > { %1075 = vperm.xlu0 %1335, %v1356_v39  }
 0x479   : > { %v1358_v40 = vpop.eup %1357  ;;  %v1062_v56 = vld [vmem:[#allocation4] sm:$0xff] }
 0x47a   : > { %1090 = vperm.xlu0 %1335, %v1358_v40  }
 0x47d   : > { %v1360_v41 = vpop.eup %1359 }
 0x47e   : > { %1105 = vperm.xlu0 %1335, %v1360_v41  }
 0x493   : > { %v655_v47 = vpop.f32.mrf.mxu0 }
 0x494   : > { %v659_v48 = vadd.f32 %v655_v47, %v581_v44 }
 0x495   : > { %v1280_v49 = vpop.f32.mrf.mxu0 }
 0x496   : > { %662 = vst.msk [vmem:[#allocation4 + $0x8] sm:$0xff] %vm273_vm0, %v659_v48 }
 0x497   : > { %v852_v52 = vpop.f32.mrf.mxu0 }
 0x498   : > { %v856_v53 = vadd.f32 %v852_v52, %v778_v24 }
 0x499   : > { %v1290_v54 = vpop.f32.mrf.mxu0 }
 0x49a   : > { %859 = vst.msk [vmem:[#allocation4 + $0x10] sm:$0xff] %vm273_vm0, %v856_v53  ;;  %v1066_v57 = vpop.permute.xlu1 %1065 }
 0x49b   : > { %v1068_v58 = vmul.f32 %v1066_v57, %v1062_v56  ;;  %v1049_v59 = vpop.f32.mrf.mxu0 }
 0x49c   : > { %v1053_v60 = vadd.f32 %v1049_v59, %v975_v55 }
 0x49d   : > { %1069 = vst.msk [vmem:[%s1550_s4] sm:$0xff] %vm273_vm0, %v1068_v58  ;;  %v1300_v61 = vpop.f32.mrf.mxu0  ;;  %v1072_v63 = vld [vmem:[#allocation4 + $0x8] sm:$0xff] }
 0x49e   : > { %1056 = vst.msk [vmem:[#allocation4 + $0x18] sm:$0xff] %vm273_vm0, %v1053_v60 }
 0x4a1   : > { %v1087_v3 = vld [vmem:[#allocation4 + $0x10] sm:$0xff] }
 0x4a5   : > { %v1102_v6 = vld [vmem:[#allocation4 + $0x18] sm:$0xff] }
 0x4f1   : > { %v1076_v62 = vpop.permute.xlu0 %1075 }
 0x4f2   : > { %v1078_v1 = vmul.f32 %v1076_v62, %v1072_v63 }
 0x4f4   : > { %1080 = vrot.lane.b32.xlu1 %v1078_v1, %s1392_s5 }
 0x4f5   : > { %v1091_v2 = vpop.permute.xlu0 %1090 }
 0x4f6   : > { %v1093_v4 = vmul.f32 %v1091_v2, %v1087_v3 }
 0x4f8   : > { %1095 = vrot.lane.b32.xlu1 %v1093_v4, %s1393_s6 }
 0x4f9   : > { %v1106_v5 = vpop.permute.xlu0 %1105 }
 0x4fa   : > { %v1108_v7 = vmul.f32 %v1106_v5, %v1102_v6 }
 0x4fc   : > { %1110 = vrot.lane.b32.xlu1 %v1108_v7, %s1394_s7 }
 0x566   : > { %v1081_v8 = vpop.permute.xlu1 %1080 }
 0x567   : > { %1084 = vst.msk [vmem:[%s1550_s4] sm:$0xff] %vm1083_vm3, %v1081_v8 }
 0x56a   : > { %v1096_v10 = vpop.permute.xlu1 %1095 }
 0x56b   : > { %1099 = vst.msk [vmem:[%s1550_s4] sm:$0xff] %vm1098_vm4, %v1096_v10 }
 0x56e   : > { %v1111_v13 = vpop.permute.xlu1 %1110 }
 0x56f   : > { %1114 = vst.msk [vmem:[%s1550_s4] sm:$0xff] %vm1113_vm5, %v1111_v13 }
 0x570 PF: > { %s13_s14 = sadd.s32 1, %s1383_s14   ;;  %s1571_s12 = smov %s1379_s13 }
 0x571   : > { %p10_p5 = scmp.ge.s32.totalorder %s13_s14, 4   ;;  %s1572_s13 = smov %s1574_s15 }
 0x573   :  { %12 = sbr.rel (!%p10_p5) target bundleno = 2 (0x2), region = 85 }

// kernel: transformer_net_forward.15
= control target key start
LH: loop header
LB: loop body
LE: loop exit
PB: predicated region body
PF: predicated region fallthrough
CT: control target
= control target key end

     0   :  { %vm18_vm0 = vcmask 261120   ;;  %v158_v2 = vmov 0.0   ;;  %s214_s1 = inlined_call_operand.vmem [shape: f32[32,32], index: 1, kind: input, shape index: {}]   ;;  %s215_s0 = inlined_call_operand.vmem [shape: f32[16,32], index: 0, kind: input, shape index: {}]   ;;  %s216_s2 = inlined_call_operand.vmem [shape: f32[1,32], index: 2, kind: input, shape index: {}]   ;;  %s217_s3 = inlined_call_operand.vmem [shape: f32[16,32], index: 3, kind: output, shape index: {}]  }
   0x1   :  { %v28_v0 = vld [vmem:[%s214_s1 + $0x18] sm:$0xff]  ;;  %v27_v1 = vld [vmem:[%s214_s1 + $0x10] sm:$0xff]  ;;  %20 = vst.msk [vmem:[#allocation2 + $0x8] sm:$0xff] %vm18_vm0, %v158_v2  ;;  %19 = vst.msk [vmem:[#allocation2] sm:$0xff] %vm18_vm0, %v158_v2 }
   0x2   :  { %146 = vmatprep.subr.mxu0 %v28_v0  ;;  %v23_v3 = vld [vmem:[%s215_s0] sm:$0xff]  ;;  %v26_v4 = vld [vmem:[%s214_s1 + $0x8] sm:$0xff] }
   0x3   :  { %147 = vmatpush3.msra.mxu0 %v28_v0  ;;  %154 = vmatprep.mubr.msk.f32.mxu0 %vm18_vm0, %v23_v3  ;;  %v25_v5 = vld [vmem:[%s214_s1] sm:$0xff]  ;;  %v24_v6 = vld [vmem:[%s215_s0 + $0x8] sm:$0xff] }
   0x4   :  { %148 = vmatprep.subr.mxu0 %v27_v1  ;;  %v139_v13 = vld [vmem:[%s216_s2] ss:$0 sm:$0xff] }
   0x5   :  { %149 = vmatpush3.msra.mxu0 %v27_v1 }
   0x6   :  { %150 = vmatprep.subr.mxu0 %v26_v4 }
   0x7   :  { %151 = vmatpush3.msra.mxu0 %v26_v4 }
   0x8   :  { %152 = vmatprep.subr.mxu0 %v25_v5  ;;  %v22_v7 = vld [vmem:[#allocation2 + $0x8] sm:$0xff]  ;;  %v21_v9 = vld [vmem:[#allocation2] sm:$0xff] }
   0x9   :  { %153 = vmatpush3.msra.mxu0 %v25_v5 }
   0xa   :  { %155 = vmatmul.mubr.msk.f32.vlgmr.msra.gmra.mxu0 %vm18_vm0, %v24_v6 }
  0xca   :  { %v156_v8 = vpop.f32.mrf.mxu0 }
  0xcb   :  { %v112_v10 = vadd.f32 %v156_v8, %v22_v7 }
  0xcc   :  { %v102_v11 = vpop.f32.mrf.mxu0 }
  0xcd   :  { %114 = vst.msk [vmem:[#allocation2 + $0x8] sm:$0xff] %vm18_vm0, %v112_v10  ;;  %v111_v12 = vadd.f32 %v102_v11, %v21_v9 }
  0xcf   :  { %113 = vst.msk [vmem:[#allocation2] sm:$0xff] %vm18_vm0, %v111_v12 }
  0xd4   :  { %v119_v14 = vld [vmem:[#allocation2 + $0x8] sm:$0xff] }
  0xd5   :  { %v128_v15 = vadd.f32 %v139_v13, %v119_v14 }
  0xd6   :  { %v118_v16 = vld [vmem:[#allocation2] sm:$0xff] }
  0xd7   :  { %v130_v17 = vmax.f32 %v128_v15, 0.0  ;;  %v127_v18 = vadd.f32 %v139_v13, %v118_v16 }
  0xd9   :  { %132 = vst.msk [vmem:[%s217_s3 + $0x8] sm:$0xff] %vm18_vm0, %v130_v17  ;;  %v129_v19 = vmax.f32 %v127_v18, 0.0 }
  0xdb   :  { %131 = vst.msk [vmem:[%s217_s3] sm:$0xff] %vm18_vm0, %v129_v19 }

// kernel: transformer_net_forward.21
= control target key start
LH: loop header
LB: loop body
LE: loop exit
PB: predicated region body
PF: predicated region fallthrough
CT: control target
= control target key end

     0   :  { %vm28_vm0 = vcmask 261120   ;;  %v258_v3 = vmov 0.0   ;;  %s345_s0 = inlined_call_operand.vmem [shape: f32[16,32], index: 0, kind: input, shape index: {}]   ;;  %s346_s1 = inlined_call_operand.vmem [shape: f32[32,32], index: 1, kind: input, shape index: {}]   ;;  %s347_s2 = inlined_call_operand.vmem [shape: f32[1,32], index: 2, kind: input, shape index: {}]   ;;  %s348_s3 = inlined_call_operand.vmem [shape: f32[16,32], index: 3, kind: input, shape index: {}]   ;;  %s349_s4 = inlined_call_operand.vmem [shape: f32[1,32], index: 4, kind: input, shape index: {}]   ;;  %s350_s5 = inlined_call_operand.vmem [shape: f32[1,32], index: 5, kind: input, shape index: {}]   ;;  %s351_s6 = inlined_call_operand.hbm [shape: f32[16,32], index: 6, kind: output, shape index: {}]  }
   0x1   :  { %v38_v0 = vld [vmem:[%s346_s1 + $0x18] sm:$0xff]  ;;  %v37_v1 = vld [vmem:[%s346_s1 + $0x10] sm:$0xff]  ;;  %v33_v2 = vld [vmem:[%s345_s0] sm:$0xff]  ;;  %30 = vst.msk [vmem:[#allocation2 + $0x8] sm:$0xff] %vm28_vm0, %v258_v3 }
   0x2   :  { %217 = vmatprep.subr.mxu0 %v38_v0  ;;  %29 = vst.msk [vmem:[#allocation2] sm:$0xff] %vm28_vm0, %v258_v3  ;;  %v36_v4 = vld [vmem:[%s346_s1 + $0x8] sm:$0xff]  ;;  %225 = vmatprep.mubr.msk.f32.mxu0 %vm28_vm0, %v33_v2 }
   0x3   :  { %218 = vmatpush3.msra.mxu0 %v38_v0 }
   0x4   :  { %11 = vsyncpa [#allocation4], 0  ;;  %219 = vmatprep.subr.mxu0 %v37_v1  ;;  %v35_v5 = vld [vmem:[%s346_s1] sm:$0xff]  ;;  %v34_v6 = vld [vmem:[%s345_s0 + $0x8] sm:$0xff]  ;;  %s259_s15 = smov [#allocation3]  }
   0x5   :  { %220 = vmatpush3.msra.mxu0 %v37_v1  ;;  %v208_v13 = vld [vmem:[%s347_s2] ss:$0 sm:$0xff]  ;;  %v140_v19 = vld [vmem:[%s348_s3 + $0x8] sm:$0xff]  ;;  %s195_s16 = sshll.u32 %s259_s15, 4  ;;  %s196_s16 = int_to_ptr.vmem [resolvable:$true] %s195_s16 }
   0x6   :  { %221 = vmatprep.subr.mxu0 %v36_v4  ;;  %v139_v16 = vld [vmem:[%s348_s3] sm:$0xff]  ;;  %s236_s17 = scalar_lea.vmem %s196_s16, 256  ;;  %p241_p1 = scmp.lt.s32.totalorder %s196_s16, %s196_s16 }
   0x7   :  { %222 = vmatpush3.msra.mxu0 %v36_v4  ;;  %v209_v41 = vld [vmem:[%s349_s4] ss:$0 sm:$0xff]  ;;  %p237_p0 = scmp.ne.s32.totalorder %s196_s16, %s236_s17  ;;  %p242_p2 = scmp.lt.s32.totalorder %s236_s17, %s236_s17 }
   0x8   :  { %223 = vmatprep.subr.mxu0 %v35_v5  ;;  %v32_v7 = vld [vmem:[#allocation2 + $0x8] sm:$0xff]  ;;  %v210_v43 = vld [vmem:[%s350_s5] ss:$0 sm:$0xff] }
   0x9   :  { %224 = vmatpush3.msra.mxu0 %v35_v5  ;;  %v31_v9 = vld [vmem:[#allocation2] sm:$0xff]  ;;  %p243_p3 = por %p242_p2, %p241_p1 }
   0xa   :  { %226 = vmatmul.mubr.msk.f32.vlgmr.msra.gmra.mxu0 %vm28_vm0, %v34_v6 }
   0xb   :  { %p244_p4 = pnand %p243_p3, %p237_p0 }
  0xca   :  { %v227_v8 = vpop.f32.mrf.mxu0 }
  0xcb   :  { %v122_v10 = vadd.f32 %v227_v8, %v32_v7 }
  0xcc   :  { %v112_v11 = vpop.f32.mrf.mxu0 }
  0xcd   :  { %124 = vst.msk [vmem:[#allocation2 + $0x8] sm:$0xff] %vm28_vm0, %v122_v10  ;;  %v121_v12 = vadd.f32 %v112_v11, %v31_v9 }
  0xcf   :  { %123 = vst.msk [vmem:[#allocation2] sm:$0xff] %vm28_vm0, %v121_v12 }
  0xd4   :  { %v129_v14 = vld [vmem:[#allocation2 + $0x8] sm:$0xff] }
  0xd5   :  { %v138_v18 = vadd.f32 %v208_v13, %v129_v14 }
  0xd6   :  { %v128_v15 = vld [vmem:[#allocation2] sm:$0xff] }
  0xd7   :  { %v137_v17 = vadd.f32 %v208_v13, %v128_v15  ;;  %v142_v22 = vadd.f32 %v140_v19, %v138_v18 }
  0xd9   :  { %v141_v20 = vadd.f32 %v139_v16, %v137_v17  ;;  %v146_v23 = vsel %vm28_vm0, %v142_v22, 0.0 }
  0xdb   :  { %v143_v21 = vsel %vm28_vm0, %v141_v20, 0.0 }
  0xdc   :  { %144 = vadd.xlane.f32.xlu0 %v143_v21 }
  0xe0   :  { %147 = vadd.xlane.f32.xlu0 %v146_v23 }
 0x165   :  { %v145_v24 = vpop.xlane.xlu0 %144 }
 0x166   :  { %v150_v25 = vmul.f32 0.03125, %v145_v24 }
 0x168   :  { %v152_v26 = vsub.f32 %v141_v20, %v150_v25 }
 0x169   :  { %v148_v27 = vpop.xlane.xlu0 %147 }
 0x16a   :  { %v151_v28 = vmul.f32 0.03125, %v148_v27  ;;  %v154_v29 = vmul.f32 %v152_v26, %v152_v26 }
 0x16c   :  { %v153_v30 = vsub.f32 %v142_v22, %v151_v28  ;;  %v156_v31 = vsel %vm28_vm0, %v154_v29, 0.0 }
 0x16d   :  { %157 = vadd.xlane.f32.xlu1 %v156_v31 }
 0x16e   :  { %v155_v32 = vmul.f32 %v153_v30, %v153_v30 }
 0x170   :  { %v159_v33 = vsel %vm28_vm0, %v155_v32, 0.0 }
 0x171   :  { %160 = vadd.xlane.f32.xlu1 %v159_v33 }
 0x1f6   :  { %v158_v34 = vpop.xlane.xlu1 %157 }
 0x1f7   :  { %v162_v35 = vmul.f32 0.03125, %v158_v34 }
 0x1f9   :  { %v164_v36 = vadd.f32 1e-05, %v162_v35 }
 0x1fa   :  { %v161_v37 = vpop.xlane.xlu1 %160 }
 0x1fb   :  { %232 = vrsqrt.f32 %v164_v36  ;;  %v163_v38 = vmul.f32 0.03125, %v161_v37 }
 0x1fd   :  { %v165_v39 = vadd.f32 1e-05, %v163_v38 }
 0x1ff   :  { %234 = vrsqrt.f32 %v165_v39 }
 0x208   :  { %v233_v40 = vpop.eup %232 }
 0x209   :  { %v168_v42 = vmul.f32 %v233_v40, %v152_v26 }
 0x20b   :  { %v177_v44 = vmul.f32 %v209_v41, %v168_v42 }
 0x20c   :  { %v235_v45 = vpop.eup %234 }
 0x20d   :  { %v169_v46 = vmul.f32 %v235_v45, %v153_v30  ;;  %v186_v47 = vadd.f32 %v210_v43, %v177_v44 }
 0x20f   :  { %v178_v48 = vmul.f32 %v209_v41, %v169_v46  ;;  %188 = vst.msk [vmem:[#allocation3] sm:$0xff] %vm28_vm0, %v186_v47 }
 0x211   :  { %v187_v49 = vadd.f32 %v210_v43, %v178_v48 }
 0x213   :  { %189 = vst.msk [vmem:[#allocation3 + $0x8] sm:$0xff] %vm28_vm0, %v187_v49 }
 0x214   :  { %247 = shalt.err (!%p244_p4)
}
 0x215   :  { %s260_s4 = smov 128   ;;  %s261_s5 = smov 8  }
 0x216   :  { %201 = dma.vmem_to_hbm [thread:$0]  %s196_s16, 256, %s351_s6, [#allocation4], %s260_s4, %s260_s4, %s261_s5  }
 0x217   :  { %256 = dma.done.wait [#allocation4], 256  }
 0x218   :  { %257 = vsyncadd [#allocation4], 4294967040 }
 0x219   :  { %205 = vsyncpa [#allocation4], 1 }

</bundles_post_ra>
